<compile_context>
chip_gen: v7x
topology: tpu7x:2x2x1
jax: 0.10.0
libtpu: 0.0.40
codegen_flags: <defaults>
</compile_context>

<pallas_src>
import numpy as np

import jax
import jax.numpy as jnp
from jax import lax
from jax.experimental import pallas as pl
from jax.experimental.pallas import tpu as pltpu


# ----------------------------------------------------------------------------
# Constant index table: 6 input rows feeding each pooled conv1 output row.
# Kernel row-blocks u1 use an h-parity-major ordering of the 12 pooled rows
# (h1 = 2*(u1 % 6) + u1 // 6) so that stage 2 can slice y1 with contiguous,
# sublane-aligned row ranges.
# ----------------------------------------------------------------------------
_U1 = np.arange(12)
_H1 = 2 * (_U1 % 6) + (_U1 // 6)
_HX = (2 * _H1[:, None] + np.arange(6)[None, :]).astype(np.int32)   # (12, 6)


# ----------------------------------------------------------------------------
# Fused forward kernel (one batch tile of `tb` samples per grid step)
# ----------------------------------------------------------------------------
def _net_fwd_kernel(xc_ref, w1_ref, b1_ref, w2_ref, b2_ref,
                    fw1_ref, fb1_ref, fw2_ref, fb2_ref, o_ref):
    tb = o_ref.shape[0]

    # -------- stage 1: conv1 (5x5, 1->10) + 2x2 max-pool + bias + ReLU --------
    # xc_ref rows = (u1, b); columns = 6x28 input-row window of that pooled row.
    # w1_ref folds conv kh/kw, the 2x2 pool offsets (hp, wp) and the output
    # (w1, c1) into 4 lane-group-aligned column blocks of 128, so conv1 + pool
    # collapse to one MXU matmul plus a max over 4 lane groups.
    t1 = jnp.dot(xc_ref[...], w1_ref[...],
                 preferred_element_type=jnp.float32)                 # (12tb, 512)
    m1 = jnp.maximum(jnp.maximum(t1[:, 0:128], t1[:, 128:256]),
                     jnp.maximum(t1[:, 256:384], t1[:, 384:512]))
    y1 = jnp.maximum(m1 + b1_ref[...], 0.0)       # (12tb, 128): [(u1,b), w1*10+c1]

    # -------- stage 2: conv2 (5x5, 10->20) + 2x2 max-pool + bias + ReLU --------
    # TODO(synk): nn.Dropout2d is stochastic (training only); identity here.
    blocks = []
    for j2 in range(6):                           # 6 y1-rows feed each pooled row
        u_start = (j2 % 2) * 6 + j2 // 2          # parity-major row ordering
        blocks.append(y1[u_start * tb:(u_start + 4) * tb, :])        # (4tb, 128)
    lhs2 = jnp.concatenate(blocks, axis=-1)       # (4tb, 768), 128-aligned concat
    t2 = jnp.dot(lhs2, w2_ref[...],
                 preferred_element_type=jnp.float32)                 # (4tb, 512)
    m2 = jnp.maximum(jnp.maximum(t2[:, 0:128], t2[:, 128:256]),
                     jnp.maximum(t2[:, 256:384], t2[:, 384:512]))
    y2 = jnp.maximum(m2 + b2_ref[...], 0.0)       # (4tb, 128): [(h2,b), w2*20+c2]

    # -------- stage 3: fc1 + ReLU + fc2 + log_softmax --------
    # TODO(synk): F.dropout between fc1 and fc2 is stochastic; identity here.
    h = jnp.dot(y2[0:tb, :], fw1_ref[0], preferred_element_type=jnp.float32)
    for h2 in range(1, 4):
        h = h + jnp.dot(y2[h2 * tb:(h2 + 1) * tb, :], fw1_ref[h2],
                        preferred_element_type=jnp.float32)
    h = jnp.maximum(h + fb1_ref[...], 0.0)                           # (tb, 50)
    z = jnp.dot(h, fw2_ref[...], preferred_element_type=jnp.float32) + fb2_ref[...]
    zmax = jnp.max(z, axis=-1, keepdims=True)
    lse = jnp.log(jnp.sum(jnp.exp(z - zmax), axis=-1, keepdims=True)) + zmax
    o_ref[...] = z - lse                                             # (tb, 10)


# ----------------------------------------------------------------------------
# One-time parameter repacking (host-side, numpy)
# ----------------------------------------------------------------------------
def prepare_params(params):
    """Pack PyTorch-layout params into the banded / lane-blocked kernel weights."""
    c1w, c1b, c2w, c2b, f1w, f1b, f2w, f2b = [np.asarray(p, np.float32)
                                              for p in params]

    # W1[(j1*28+wi), hp*256+wp*128+w1*10+c1] = conv1.w[c1,0,j1-hp,wi-(2w1+wp)]
    W1 = np.zeros((6 * 28, 512), np.float32)
    for hp in range(2):
        for wp in range(2):
            cbase = hp * 256 + wp * 128
            for kh in range(5):
                j1 = hp + kh
                for kw in range(5):
                    for w1 in range(12):
                        wi = 2 * w1 + wp + kw
                        W1[j1 * 28 + wi,
                           cbase + 10 * w1: cbase + 10 * w1 + 10] = c1w[:, 0, kh, kw]

    # W2[(j2*128+w1*10+c1), hp*256+wp*128+w2*20+c2] = conv2.w[c2,c1,j2-hp,w1-(2w2+wp)]
    W2 = np.zeros((6 * 128, 512), np.float32)
    for hp in range(2):
        for wp in range(2):
            cbase = hp * 256 + wp * 128
            for kh in range(5):
                j2 = hp + kh
                for kw in range(5):
                    for w2 in range(4):
                        w1 = 2 * w2 + wp + kw
                        W2[j2 * 128 + 10 * w1: j2 * 128 + 10 * w1 + 10,
                           cbase + 20 * w2: cbase + 20 * w2 + 20] = c2w[:, :, kh, kw].T

    b1p = np.zeros((1, 128), np.float32)
    for w1 in range(12):
        b1p[0, 10 * w1: 10 * w1 + 10] = c1b
    b2p = np.zeros((1, 128), np.float32)
    for w2 in range(4):
        b2p[0, 20 * w2: 20 * w2 + 20] = c2b

    # fc1 rows regrouped per conv2 pooled-row block h2 (kernel y2 layout), with
    # the torch NCHW flatten order (c2*16 + h2*4 + w2) baked into the rows.
    FW1 = np.zeros((4, 128, 50), np.float32)
    FW1[:, :80, :] = f1w.reshape(50, 20, 4, 4).transpose(2, 3, 1, 0).reshape(4, 80, 50)
    fb1p = f1b.reshape(1, 50)
    FW2 = np.ascontiguousarray(f2w.T)            # (50, 10)
    fb2p = f2b.reshape(1, 10)

    return tuple(jnp.asarray(a, jnp.float32) for a in
                 (W1, b1p, W2, b2p, FW1, fb1p, FW2, fb2p))


# ----------------------------------------------------------------------------
# Wrapper: batch tiling + the single pallas_call
# ----------------------------------------------------------------------------
def _pick_tb(b):
    if b >= 64:
        return 32
    if b >= 32:
        return 16
    return 8


def net_forward_pallas(x, packed, *, tb=None):
    """x: (B, 1, 28, 28) float32.  Returns (B, 10) log-probabilities."""
    W1, b1p, W2, b2p, FW1, fb1p, FW2, fb2p = packed
    B = x.shape[0]
    if tb is None:
        tb = _pick_tb(B)
    n = pl.cdiv(B, tb)
    Bp = n * tb

    X = x[:, 0].astype(jnp.float32)                       # (B, 28, 28)
    if Bp != B:
        X = jnp.pad(X, ((0, Bp - B), (0, 0), (0, 0)))

    # Only XLA-side glue: a same-dtype height-window gather (~2.6x input size),
    # laid out so each batch tile is a contiguous (12*tb, 168) row block with
    # rows ordered (u1, b) exactly as the kernel consumes them.
    xc = X[:, _HX, :]                                     # (Bp, 12, 6, 28)
    xc = xc.reshape(n, tb, 12, 6 * 28)
    xc = jnp.transpose(xc, (0, 2, 1, 3)).reshape(n * 12 * tb, 6 * 28)

    out = pl.pallas_call(
        _net_fwd_kernel,
        out_shape=jax.ShapeDtypeStruct((Bp, 10), jnp.float32),
        grid=(n,),
        in_specs=[
            pl.BlockSpec((12 * tb, 6 * 28), lambda i: (i, 0)),
            pl.BlockSpec(W1.shape, lambda i: (0, 0)),
            pl.BlockSpec(b1p.shape, lambda i: (0, 0)),
            pl.BlockSpec(W2.shape, lambda i: (0, 0)),
            pl.BlockSpec(b2p.shape, lambda i: (0, 0)),
            pl.BlockSpec(FW1.shape, lambda i: (0, 0, 0)),
            pl.BlockSpec(fb1p.shape, lambda i: (0, 0)),
            pl.BlockSpec(FW2.shape, lambda i: (0, 0)),
            pl.BlockSpec(fb2p.shape, lambda i: (0, 0)),
        ],
        out_specs=pl.BlockSpec((tb, 10), lambda i: (i, 0)),
        compiler_params=pltpu.CompilerParams(
            dimension_semantics=("parallel",)),
    )(xc, W1, b1p, W2, b2p, FW1, fb1p, FW2, fb2p)
    return out[:B]


# ----------------------------------------------------------------------------
# Pure-JAX reference (PyTorch layouts, full-precision matmuls)
# ----------------------------------------------------------------------------
def net_forward_reference(x, params):
    c1w, c1b, c2w, c2b, f1w, f1b, f2w, f2b = params
    dn = ("NCHW", "OIHW", "NCHW")
    hp = lax.Precision.HIGHEST
    y = lax.conv_general_dilated(x, c1w, (1, 1), "VALID", dimension_numbers=dn,
                                 precision=hp) + c1b.reshape(1, -1, 1, 1)
    y = lax.reduce_window(y, -jnp.inf, lax.max, (1, 1, 2, 2), (1, 1, 2, 2), "VALID")
    y = jnp.maximum(y, 0.0)
    y = lax.conv_general_dilated(y, c2w, (1, 1), "VALID", dimension_numbers=dn,
                                 precision=hp) + c2b.reshape(1, -1, 1, 1)
    y = lax.reduce_window(y, -jnp.inf, lax.max, (1, 1, 2, 2), (1, 1, 2, 2), "VALID")
    y = jnp.maximum(y, 0.0)
    y = y.reshape(y.shape[0], -1)
    y = jnp.maximum(jnp.dot(y, f1w.T, precision=hp) + f1b, 0.0)
    z = jnp.dot(y, f2w.T, precision=hp) + f2b
    return jax.nn.log_softmax(z, axis=-1)


# ----------------------------------------------------------------------------
# Main
# ----------------------------------------------------------------------------
if __name__ == "__main__":
    key = jax.random.PRNGKey(0)
    kx, kp = jax.random.split(key)
    ks = jax.random.split(kp, 8)

    # deterministic synthetic parameters (shapes from Net.__init__)
    params = (
        jax.random.normal(ks[0], (10, 1, 5, 5), jnp.float32) * 0.2,    # conv1.weight
        jax.random.normal(ks[1], (10,), jnp.float32) * 0.1,            # conv1.bias
        jax.random.normal(ks[2], (20, 10, 5, 5), jnp.float32) * 0.1,   # conv2.weight
        jax.random.normal(ks[3], (20,), jnp.float32) * 0.1,            # conv2.bias
        jax.random.normal(ks[4], (50, 320), jnp.float32) * 0.05,       # fc1.weight
        jax.random.normal(ks[5], (50,), jnp.float32) * 0.05,           # fc1.bias
        jax.random.normal(ks[6], (10, 50), jnp.float32) * 0.1,         # fc2.weight
        jax.random.normal(ks[7], (10,), jnp.float32) * 0.1,            # fc2.bias
    )

    packed = prepare_params(params)            # one-time weight repacking
    fwd = jax.jit(net_forward_pallas)

    # batch=2 (required example) and batch=37 (ragged last tile, multi-step grid)
    for batch in (2, 37):
        xb = jax.random.normal(jax.random.fold_in(kx, batch),
                               (batch, 1, 28, 28), jnp.float32)
        out = jax.block_until_ready(fwd(xb, packed))            # (batch, 10)
        ref = jax.block_until_ready(net_forward_reference(xb, params))
        if not jnp.allclose(out, ref, rtol=2e-3, atol=2e-3):
            raise AssertionError(
                f"Pallas output mismatch at batch={batch} (max abs diff "
                f"{float(jnp.max(jnp.abs(out - ref)))})")

    print("KERNEL_OK")
</pallas_src>

<mosaic_0001>
module attributes {stable_mosaic.version = 11 : i64} {
  func.func @_net_fwd_kernel(%arg0: i32, %arg1: memref<96x168xf32, #tpu.memory_space<vmem>>, %arg2: memref<168x512xf32, #tpu.memory_space<vmem>>, %arg3: memref<1x128xf32, #tpu.memory_space<vmem>>, %arg4: memref<768x512xf32, #tpu.memory_space<vmem>>, %arg5: memref<1x128xf32, #tpu.memory_space<vmem>>, %arg6: memref<4x128x50xf32, #tpu.memory_space<vmem>>, %arg7: memref<1x50xf32, #tpu.memory_space<vmem>>, %arg8: memref<50x10xf32, #tpu.memory_space<vmem>>, %arg9: memref<1x10xf32, #tpu.memory_space<vmem>>, %arg10: memref<8x10xf32, #tpu.memory_space<vmem>>) attributes {dimension_semantics = [#tpu.dimension_semantics<parallel>], iteration_bounds = array<i64: 1>, scalar_prefetch = 0 : i64, scratch_operands = 0 : i64, tpu.core_type = #tpu.core_type<tc>, window_params = [{transform_indices = @transform_0, window_bounds = array<i64: 96, 168>}, {pipeline_mode = #tpu.pipeline_mode<synchronous>, transform_indices = @transform_1, window_bounds = array<i64: 168, 512>}, {pipeline_mode = #tpu.pipeline_mode<synchronous>, transform_indices = @transform_2, window_bounds = array<i64: 1, 128>}, {pipeline_mode = #tpu.pipeline_mode<synchronous>, transform_indices = @transform_3, window_bounds = array<i64: 768, 512>}, {pipeline_mode = #tpu.pipeline_mode<synchronous>, transform_indices = @transform_4, window_bounds = array<i64: 1, 128>}, {pipeline_mode = #tpu.pipeline_mode<synchronous>, transform_indices = @transform_5, window_bounds = array<i64: 4, 128, 50>}, {pipeline_mode = #tpu.pipeline_mode<synchronous>, transform_indices = @transform_6, window_bounds = array<i64: 1, 50>}, {pipeline_mode = #tpu.pipeline_mode<synchronous>, transform_indices = @transform_7, window_bounds = array<i64: 50, 10>}, {pipeline_mode = #tpu.pipeline_mode<synchronous>, transform_indices = @transform_8, window_bounds = array<i64: 1, 10>}, {transform_indices = @transform_9, window_bounds = array<i64: 8, 10>}]} {
    %c0 = arith.constant 0 : index
    %c0_0 = arith.constant 0 : index
    %0 = vector.load %arg1[%c0, %c0_0] : memref<96x168xf32, #tpu.memory_space<vmem>>, vector<96x168xf32>
    %c0_1 = arith.constant 0 : index
    %c0_2 = arith.constant 0 : index
    %1 = vector.load %arg2[%c0_1, %c0_2] : memref<168x512xf32, #tpu.memory_space<vmem>>, vector<168x512xf32>
    %cst = arith.constant dense<0.000000e+00> : vector<96x512xf32>
    %2 = tpu.matmul %0, %1, %cst {dimension_numbers = #tpu.dot_dimension_numbers<[1], [0], [0], [1], [0, 0, 1, 1], [], []>} : vector<96x168xf32>, vector<168x512xf32>, vector<96x512xf32> -> vector<96x512xf32>
    %3 = vector.extract_strided_slice %2 {offsets = [0, 0], sizes = [96, 128], strides = [1, 1]} : vector<96x512xf32> to vector<96x128xf32>
    %4 = vector.extract_strided_slice %2 {offsets = [0, 128], sizes = [96, 128], strides = [1, 1]} : vector<96x512xf32> to vector<96x128xf32>
    %5 = arith.maximumf %3, %4 : vector<96x128xf32>
    %6 = vector.extract_strided_slice %2 {offsets = [0, 256], sizes = [96, 128], strides = [1, 1]} : vector<96x512xf32> to vector<96x128xf32>
    %7 = vector.extract_strided_slice %2 {offsets = [0, 384], sizes = [96, 128], strides = [1, 1]} : vector<96x512xf32> to vector<96x128xf32>
    %8 = arith.maximumf %6, %7 : vector<96x128xf32>
    %9 = arith.maximumf %5, %8 : vector<96x128xf32>
    %c0_3 = arith.constant 0 : index
    %c0_4 = arith.constant 0 : index
    %10 = vector.load %arg3[%c0_3, %c0_4] : memref<1x128xf32, #tpu.memory_space<vmem>>, vector<1x128xf32>
    %11 = vector.broadcast %10 : vector<1x128xf32> to vector<96x128xf32>
    %12 = arith.addf %9, %11 : vector<96x128xf32>
    %cst_5 = arith.constant 0.000000e+00 : f32
    %13 = vector.broadcast %cst_5 : f32 to vector<96x128xf32>
    %14 = arith.maximumf %12, %13 : vector<96x128xf32>
    %15 = vector.extract_strided_slice %14 {offsets = [0, 0], sizes = [32, 128], strides = [1, 1]} : vector<96x128xf32> to vector<32x128xf32>
    %16 = vector.extract_strided_slice %14 {offsets = [48, 0], sizes = [32, 128], strides = [1, 1]} : vector<96x128xf32> to vector<32x128xf32>
    %17 = vector.extract_strided_slice %14 {offsets = [8, 0], sizes = [32, 128], strides = [1, 1]} : vector<96x128xf32> to vector<32x128xf32>
    %18 = vector.extract_strided_slice %14 {offsets = [56, 0], sizes = [32, 128], strides = [1, 1]} : vector<96x128xf32> to vector<32x128xf32>
    %19 = vector.extract_strided_slice %14 {offsets = [16, 0], sizes = [32, 128], strides = [1, 1]} : vector<96x128xf32> to vector<32x128xf32>
    %20 = vector.extract_strided_slice %14 {offsets = [64, 0], sizes = [32, 128], strides = [1, 1]} : vector<96x128xf32> to vector<32x128xf32>
    %21 = tpu.concatenate %15, %16, %17, %18, %19, %20 in 1 : vector<32x128xf32>, vector<32x128xf32>, vector<32x128xf32>, vector<32x128xf32>, vector<32x128xf32>, vector<32x128xf32> -> vector<32x768xf32>
    %c0_6 = arith.constant 0 : index
    %c0_7 = arith.constant 0 : index
    %22 = vector.load %arg4[%c0_6, %c0_7] : memref<768x512xf32, #tpu.memory_space<vmem>>, vector<768x512xf32>
    %cst_8 = arith.constant dense<0.000000e+00> : vector<32x512xf32>
    %23 = tpu.matmul %21, %22, %cst_8 {dimension_numbers = #tpu.dot_dimension_numbers<[1], [0], [0], [1], [0, 0, 1, 1], [], []>} : vector<32x768xf32>, vector<768x512xf32>, vector<32x512xf32> -> vector<32x512xf32>
    %24 = vector.extract_strided_slice %23 {offsets = [0, 0], sizes = [32, 128], strides = [1, 1]} : vector<32x512xf32> to vector<32x128xf32>
    %25 = vector.extract_strided_slice %23 {offsets = [0, 128], sizes = [32, 128], strides = [1, 1]} : vector<32x512xf32> to vector<32x128xf32>
    %26 = arith.maximumf %24, %25 : vector<32x128xf32>
    %27 = vector.extract_strided_slice %23 {offsets = [0, 256], sizes = [32, 128], strides = [1, 1]} : vector<32x512xf32> to vector<32x128xf32>
    %28 = vector.extract_strided_slice %23 {offsets = [0, 384], sizes = [32, 128], strides = [1, 1]} : vector<32x512xf32> to vector<32x128xf32>
    %29 = arith.maximumf %27, %28 : vector<32x128xf32>
    %30 = arith.maximumf %26, %29 : vector<32x128xf32>
    %c0_9 = arith.constant 0 : index
    %c0_10 = arith.constant 0 : index
    %31 = vector.load %arg5[%c0_9, %c0_10] : memref<1x128xf32, #tpu.memory_space<vmem>>, vector<1x128xf32>
    %32 = vector.broadcast %31 : vector<1x128xf32> to vector<32x128xf32>
    %33 = arith.addf %30, %32 : vector<32x128xf32>
    %cst_11 = arith.constant 0.000000e+00 : f32
    %34 = vector.broadcast %cst_11 : f32 to vector<32x128xf32>
    %35 = arith.maximumf %33, %34 : vector<32x128xf32>
    %36 = vector.extract_strided_slice %35 {offsets = [0, 0], sizes = [8, 128], strides = [1, 1]} : vector<32x128xf32> to vector<8x128xf32>
    %c0_12 = arith.constant 0 : index
    %c0_13 = arith.constant 0 : index
    %c0_14 = arith.constant 0 : index
    %37 = vector.load %arg6[%c0_12, %c0_13, %c0_14] : memref<4x128x50xf32, #tpu.memory_space<vmem>>, vector<1x128x50xf32>
    %38 = vector.shape_cast %37 : vector<1x128x50xf32> to vector<128x50xf32>
    %cst_15 = arith.constant dense<0.000000e+00> : vector<8x50xf32>
    %39 = tpu.matmul %36, %38, %cst_15 {dimension_numbers = #tpu.dot_dimension_numbers<[1], [0], [0], [1], [0, 0, 1, 1], [], []>} : vector<8x128xf32>, vector<128x50xf32>, vector<8x50xf32> -> vector<8x50xf32>
    %40 = vector.extract_strided_slice %35 {offsets = [8, 0], sizes = [8, 128], strides = [1, 1]} : vector<32x128xf32> to vector<8x128xf32>
    %c1 = arith.constant 1 : index
    %c0_16 = arith.constant 0 : index
    %c0_17 = arith.constant 0 : index
    %41 = vector.load %arg6[%c1, %c0_16, %c0_17] : memref<4x128x50xf32, #tpu.memory_space<vmem>>, vector<1x128x50xf32>
    %42 = vector.shape_cast %41 : vector<1x128x50xf32> to vector<128x50xf32>
    %cst_18 = arith.constant dense<0.000000e+00> : vector<8x50xf32>
    %43 = tpu.matmul %40, %42, %cst_18 {dimension_numbers = #tpu.dot_dimension_numbers<[1], [0], [0], [1], [0, 0, 1, 1], [], []>} : vector<8x128xf32>, vector<128x50xf32>, vector<8x50xf32> -> vector<8x50xf32>
    %44 = arith.addf %39, %43 : vector<8x50xf32>
    %45 = vector.extract_strided_slice %35 {offsets = [16, 0], sizes = [8, 128], strides = [1, 1]} : vector<32x128xf32> to vector<8x128xf32>
    %c2 = arith.constant 2 : index
    %c0_19 = arith.constant 0 : index
    %c0_20 = arith.constant 0 : index
    %46 = vector.load %arg6[%c2, %c0_19, %c0_20] : memref<4x128x50xf32, #tpu.memory_space<vmem>>, vector<1x128x50xf32>
    %47 = vector.shape_cast %46 : vector<1x128x50xf32> to vector<128x50xf32>
    %cst_21 = arith.constant dense<0.000000e+00> : vector<8x50xf32>
    %48 = tpu.matmul %45, %47, %cst_21 {dimension_numbers = #tpu.dot_dimension_numbers<[1], [0], [0], [1], [0, 0, 1, 1], [], []>} : vector<8x128xf32>, vector<128x50xf32>, vector<8x50xf32> -> vector<8x50xf32>
    %49 = arith.addf %44, %48 : vector<8x50xf32>
    %50 = vector.extract_strided_slice %35 {offsets = [24, 0], sizes = [8, 128], strides = [1, 1]} : vector<32x128xf32> to vector<8x128xf32>
    %c3 = arith.constant 3 : index
    %c0_22 = arith.constant 0 : index
    %c0_23 = arith.constant 0 : index
    %51 = vector.load %arg6[%c3, %c0_22, %c0_23] : memref<4x128x50xf32, #tpu.memory_space<vmem>>, vector<1x128x50xf32>
    %52 = vector.shape_cast %51 : vector<1x128x50xf32> to vector<128x50xf32>
    %cst_24 = arith.constant dense<0.000000e+00> : vector<8x50xf32>
    %53 = tpu.matmul %50, %52, %cst_24 {dimension_numbers = #tpu.dot_dimension_numbers<[1], [0], [0], [1], [0, 0, 1, 1], [], []>} : vector<8x128xf32>, vector<128x50xf32>, vector<8x50xf32> -> vector<8x50xf32>
    %54 = arith.addf %49, %53 : vector<8x50xf32>
    %c0_25 = arith.constant 0 : index
    %c0_26 = arith.constant 0 : index
    %55 = vector.load %arg7[%c0_25, %c0_26] : memref<1x50xf32, #tpu.memory_space<vmem>>, vector<1x50xf32>
    %56 = vector.broadcast %55 : vector<1x50xf32> to vector<8x50xf32>
    %57 = arith.addf %54, %56 : vector<8x50xf32>
    %cst_27 = arith.constant 0.000000e+00 : f32
    %58 = vector.broadcast %cst_27 : f32 to vector<8x50xf32>
    %59 = arith.maximumf %57, %58 : vector<8x50xf32>
    %c0_28 = arith.constant 0 : index
    %c0_29 = arith.constant 0 : index
    %60 = vector.load %arg8[%c0_28, %c0_29] : memref<50x10xf32, #tpu.memory_space<vmem>>, vector<50x10xf32>
    %cst_30 = arith.constant dense<0.000000e+00> : vector<8x10xf32>
    %61 = tpu.matmul %59, %60, %cst_30 {dimension_numbers = #tpu.dot_dimension_numbers<[1], [0], [0], [1], [0, 0, 1, 1], [], []>} : vector<8x50xf32>, vector<50x10xf32>, vector<8x10xf32> -> vector<8x10xf32>
    %c0_31 = arith.constant 0 : index
    %c0_32 = arith.constant 0 : index
    %62 = vector.load %arg9[%c0_31, %c0_32] : memref<1x10xf32, #tpu.memory_space<vmem>>, vector<1x10xf32>
    %63 = vector.broadcast %62 : vector<1x10xf32> to vector<8x10xf32>
    %64 = arith.addf %61, %63 : vector<8x10xf32>
    %cst_33 = arith.constant dense<0xFF800000> : vector<8xf32>
    %65 = vector.multi_reduction <maximumf>, %64, %cst_33 [1] : vector<8x10xf32> to vector<8xf32>
    %66 = vector.shape_cast %65 : vector<8xf32> to vector<8x1xf32>
    %67 = vector.broadcast %66 : vector<8x1xf32> to vector<8x10xf32>
    %68 = arith.subf %64, %67 : vector<8x10xf32>
    %69 = math.exp %68 : vector<8x10xf32>
    %cst_34 = arith.constant dense<0.000000e+00> : vector<8xf32>
    %70 = vector.multi_reduction <add>, %69, %cst_34 [1] : vector<8x10xf32> to vector<8xf32>
    %71 = vector.shape_cast %70 : vector<8xf32> to vector<8x1xf32>
    %72 = math.log %71 : vector<8x1xf32>
    %73 = arith.addf %72, %66 : vector<8x1xf32>
    %74 = vector.broadcast %73 : vector<8x1xf32> to vector<8x10xf32>
    %75 = arith.subf %64, %74 : vector<8x10xf32>
    %c0_35 = arith.constant 0 : index
    %c0_36 = arith.constant 0 : index
    %76 = vector.load %arg10[%c0_35, %c0_36] : memref<8x10xf32, #tpu.memory_space<vmem>>, vector<8x10xf32>
    tpu.vector_store %arg10[%c0_35, %c0_36], %75 {strides = array<i32>} : memref<8x10xf32, #tpu.memory_space<vmem>>, vector<8x10xf32>,
    return
  }
  func.func @transform_0(%arg0: i32) -> (i32, i32) {
    %c0_i32 = arith.constant 0 : i32
    %c0_i32_0 = arith.constant 0 : i32
    return %arg0, %c0_i32 : i32, i32
  }
  func.func @transform_1(%arg0: i32) -> (i32, i32) {
    %c0_i32 = arith.constant 0 : i32
    %c0_i32_0 = arith.constant 0 : i32
    %c0_i32_1 = arith.constant 0 : i32
    return %c0_i32, %c0_i32_0 : i32, i32
  }
  func.func @transform_2(%arg0: i32) -> (i32, i32) {
    %c0_i32 = arith.constant 0 : i32
    %c0_i32_0 = arith.constant 0 : i32
    %c0_i32_1 = arith.constant 0 : i32
    return %c0_i32, %c0_i32_0 : i32, i32
  }
  func.func @transform_3(%arg0: i32) -> (i32, i32) {
    %c0_i32 = arith.constant 0 : i32
    %c0_i32_0 = arith.constant 0 : i32
    %c0_i32_1 = arith.constant 0 : i32
    return %c0_i32, %c0_i32_0 : i32, i32
  }
  func.func @transform_4(%arg0: i32) -> (i32, i32) {
    %c0_i32 = arith.constant 0 : i32
    %c0_i32_0 = arith.constant 0 : i32
    %c0_i32_1 = arith.constant 0 : i32
    return %c0_i32, %c0_i32_0 : i32, i32
  }
  func.func @transform_5(%arg0: i32) -> (i32, i32, i32) {
    %c0_i32 = arith.constant 0 : i32
    %c0_i32_0 = arith.constant 0 : i32
    %c0_i32_1 = arith.constant 0 : i32
    %c0_i32_2 = arith.constant 0 : i32
    return %c0_i32, %c0_i32_0, %c0_i32_1 : i32, i32, i32
  }
  func.func @transform_6(%arg0: i32) -> (i32, i32) {
    %c0_i32 = arith.constant 0 : i32
    %c0_i32_0 = arith.constant 0 : i32
    %c0_i32_1 = arith.constant 0 : i32
    return %c0_i32, %c0_i32_0 : i32, i32
  }
  func.func @transform_7(%arg0: i32) -> (i32, i32) {
    %c0_i32 = arith.constant 0 : i32
    %c0_i32_0 = arith.constant 0 : i32
    %c0_i32_1 = arith.constant 0 : i32
    return %c0_i32, %c0_i32_0 : i32, i32
  }
  func.func @transform_8(%arg0: i32) -> (i32, i32) {
    %c0_i32 = arith.constant 0 : i32
    %c0_i32_0 = arith.constant 0 : i32
    %c0_i32_1 = arith.constant 0 : i32
    return %c0_i32, %c0_i32_0 : i32, i32
  }
  func.func @transform_9(%arg0: i32) -> (i32, i32) {
    %c0_i32 = arith.constant 0 : i32
    %c0_i32_0 = arith.constant 0 : i32
    return %arg0, %c0_i32 : i32, i32
  }
}

</mosaic_0001>

<bundles_post_ra>
// kernel: net_forward_pallas.1
= control target key start
LH: loop header
LB: loop body
LE: loop exit
PB: predicated region body
PF: predicated region fallthrough
CT: control target
= control target key end

     0   :  { %14 = vsyncpa [#allocation3], 0  ;;  %s2893_s30 = smov [#allocation2]   ;;  %s4586_s0 = inlined_call_operand.vmem [shape: f32[96,168], index: 0, kind: input, shape index: {}]   ;;  %s4587_s1 = inlined_call_operand.hbm [shape: f32[168,512], index: 1, kind: input, shape index: {}]   ;;  %s4588_s2 = inlined_call_operand.vmem [shape: f32[1,128], index: 2, kind: input, shape index: {}]   ;;  %s4589_s3 = inlined_call_operand.vmem [shape: f32[768,512], index: 3, kind: input, shape index: {}]   ;;  %s4590_s4 = inlined_call_operand.vmem [shape: f32[1,128], index: 4, kind: input, shape index: {}]   ;;  %s4591_s5 = inlined_call_operand.vmem [shape: f32[4,128,50], index: 5, kind: input, shape index: {}]   ;;  %s4592_s6 = inlined_call_operand.vmem [shape: f32[1,50], index: 6, kind: input, shape index: {}]   ;;  %s4593_s7 = inlined_call_operand.vmem [shape: f32[50,10], index: 7, kind: input, shape index: {}]   ;;  %s4594_s8 = inlined_call_operand.vmem [shape: f32[1,10], index: 8, kind: input, shape index: {}]   ;;  %s4595_s9 = inlined_call_operand.vmem [shape: f32[8,10], index: 9, kind: output, shape index: {}]  }
   0x1   :  { %s22_s10 = sshll.u32 %s2893_s30, 4  ;;  %s2869_s13 = scalar_lea.hbm %s4587_s1, 10752  ;;  %s23_s10 = int_to_ptr.vmem [resolvable:$true] %s22_s10 }
   0x2   :  { %p2870_p0 = scmp.ne.s32.totalorder %s4587_s1, %s2869_s13  ;;  %p2873_p1 = scmp.lt.u32.totalorder %s2869_s13, %s4587_s1 }
   0x4   :  { %p2875_p2 = pnand %p2873_p1, %p2870_p0 }
   0x6   :  { %2878 = shalt.err (!%p2875_p2)
}
   0x7   :  { %s2879_s18 = scalar_lea.vmem %s23_s10, 10752  ;;  %p2884_p4 = scmp.lt.s32.totalorder %s23_s10, %s23_s10 }
   0x8   :  { %p2880_p3 = scmp.ne.s32.totalorder %s23_s10, %s2879_s18  ;;  %p2885_p5 = scmp.lt.s32.totalorder %s2879_s18, %s2879_s18 }
   0xa   :  { %p2886_p6 = por %p2885_p5, %p2884_p4 }
   0xc   :  { %p2887_p7 = pnand %p2886_p6, %p2880_p3 }
   0xe   :  { %2890 = shalt.err (!%p2887_p7)
}
   0xf   :  { %s2894_s19 = smov 512   ;;  %s2895_s20 = smov 32  }
  0x10   :  { %28 = dma.hbm_to_vmem [thread:$0]  %s4587_s1, 10752, %s23_s10, [#allocation3], %s2894_s19, %s2894_s19, %s2895_s20  }
  0x11   :  { %2891 = dma.done.wait [#allocation3], 10752  }
  0x12   :  { %2892 = vsyncadd [#allocation3], 4294956544  ;;  %v71_v0 = vld [vmem:[#allocation2 + $0x8] sm:$0xff]  ;;  %v73_v2 = vld [vmem:[#allocation2 + $0x18] sm:$0xff]  ;;  %vm154_vm0 = vcmask 326656   ;;  %vm2897_vm1 = vmmov 0  }
  0x13   :  { %v75_v1 = vld [vmem:[#allocation2 + $0x28] sm:$0xff]  ;;  %v77_v4 = vld [vmem:[#allocation2 + $0x38] sm:$0xff]  ;;  %v70_v5 = vld [vmem:[#allocation2] sm:$0xff]  ;;  %vm1853_vm2 = vcmask 1041408   ;;  %vm1849_vm3 = vcmask 408576   ;;  %vm1927_vm4 = vcmask 80896  }
  0x14   :  { %v2258_v3 = vpack.c.bf16 %v75_v1, %v71_v0  ;;  %v74_v6 = vld [vmem:[#allocation2 + $0x20] sm:$0xff]  ;;  %v2298_v7 = vpack.c.bf16 %v77_v4, %v73_v2  ;;  %v72_v9 = vld [vmem:[#allocation2 + $0x10] sm:$0xff]  ;;  %v79_v11 = vld [vmem:[#allocation2 + $0x48] sm:$0xff] }
  0x15   :  { %v2260_v8 = vpack.c.bf16 %v74_v6, %v70_v5  ;;  %v76_v10 = vld [vmem:[#allocation2 + $0x30] sm:$0xff]  ;;  %v83_v13 = vld [vmem:[#allocation2 + $0x68] sm:$0xff]  ;;  %v81_v14 = vld [vmem:[#allocation2 + $0x58] sm:$0xff] }
  0x16   :  { %2259 = vmatprep.subr.bf16.mxu0 %v2258_v3  ;;  %v2300_v12 = vpack.c.bf16 %v76_v10, %v72_v9  ;;  %v85_v15 = vld [vmem:[#allocation2 + $0x78] sm:$0xff]  ;;  %2299 = vmatprep.subr.bf16.mxu1 %v2298_v7  ;;  %v2262_v16 = vpack.c.bf16 %v83_v13, %v79_v11  ;;  %v78_v18 = vld [vmem:[#allocation2 + $0x40] sm:$0xff]  ;;  %v80_v20 = vld [vmem:[#allocation2 + $0x50] sm:$0xff] }
  0x17   :  { %2261 = vmatpush1.bf16.msra.mxu0 %v2260_v8  ;;  %v2302_v17 = vpack.c.bf16 %v85_v15, %v81_v14  ;;  %v82_v19 = vld [vmem:[#allocation2 + $0x60] sm:$0xff]  ;;  %v84_v22 = vld [vmem:[#allocation2 + $0x70] sm:$0xff]  ;;  %v87_v23 = vld [vmem:[#allocation2 + $0x88] sm:$0xff] }
  0x18   :  { %2301 = vmatpush1.bf16.msra.mxu1 %v2300_v12  ;;  %v2264_v21 = vpack.c.bf16 %v82_v19, %v78_v18  ;;  %v91_v24 = vld [vmem:[#allocation2 + $0xa8] sm:$0xff]  ;;  %2263 = vmatprep.subr.bf16.mxu0 %v2262_v16  ;;  %v2304_v25 = vpack.c.bf16 %v84_v22, %v80_v20  ;;  %v89_v27 = vld [vmem:[#allocation2 + $0x98] sm:$0xff]  ;;  %v86_v29 = vld [vmem:[#allocation2 + $0x80] sm:$0xff] }
  0x19   :  { %2303 = vmatprep.subr.bf16.mxu1 %v2302_v17  ;;  %v2266_v26 = vpack.c.bf16 %v91_v24, %v87_v23  ;;  %v93_v28 = vld [vmem:[#allocation2 + $0xb8] sm:$0xff]  ;;  %v90_v31 = vld [vmem:[#allocation2 + $0xa0] sm:$0xff]  ;;  %v88_v32 = vld [vmem:[#allocation2 + $0x90] sm:$0xff] }
  0x1a   :  { %v2306_v30 = vpack.c.bf16 %v93_v28, %v89_v27  ;;  %v92_v33 = vld [vmem:[#allocation2 + $0xb0] sm:$0xff]  ;;  %v2268_v34 = vpack.c.bf16 %v90_v31, %v86_v29  ;;  %v95_v35 = vld [vmem:[#allocation2 + $0xc8] sm:$0xff]  ;;  %v97_v37 = vld [vmem:[#allocation2 + $0xd8] sm:$0xff] }
  0x1b   :  { %2265 = vmatpush1.bf16.msra.mxu0 %v2264_v21  ;;  %v99_v36 = vld [vmem:[#allocation2 + $0xe8] sm:$0xff]  ;;  %v2308_v38 = vpack.c.bf16 %v92_v33, %v88_v32  ;;  %v101_v40 = vld [vmem:[#allocation2 + $0xf8] sm:$0xff]  ;;  %v94_v41 = vld [vmem:[#allocation2 + $0xc0] sm:$0xff] }
  0x1c   :  { %2305 = vmatpush1.bf16.msra.mxu1 %v2304_v25  ;;  %2267 = vmatprep.subr.bf16.mxu0 %v2266_v26  ;;  %v2270_v39 = vpack.c.bf16 %v99_v36, %v95_v35  ;;  %v98_v42 = vld [vmem:[#allocation2 + $0xe0] sm:$0xff]  ;;  %v2310_v43 = vpack.c.bf16 %v101_v40, %v97_v37  ;;  %v96_v44 = vld [vmem:[#allocation2 + $0xd0] sm:$0xff]  ;;  %v103_v46 = vld [vmem:[#allocation2 + $0x108] sm:$0xff] }
  0x1d   :  { %2307 = vmatprep.subr.bf16.mxu1 %v2306_v30  ;;  %v100_v45 = vld [vmem:[#allocation2 + $0xf0] sm:$0xff]  ;;  %v107_v47 = vld [vmem:[#allocation2 + $0x128] sm:$0xff]  ;;  %v105_v48 = vld [vmem:[#allocation2 + $0x118] sm:$0xff]  ;;  %v2272_v50 = vpack.c.bf16 %v98_v42, %v94_v41 }
  0x1e   :  { %v109_v49 = vld [vmem:[#allocation2 + $0x138] sm:$0xff]  ;;  %v2312_v51 = vpack.c.bf16 %v100_v45, %v96_v44  ;;  %v2274_v52 = vpack.c.bf16 %v107_v47, %v103_v46  ;;  %v102_v53 = vld [vmem:[#allocation2 + $0x100] sm:$0xff]  ;;  %v104_v55 = vld [vmem:[#allocation2 + $0x110] sm:$0xff] }
  0x1f   :  { %2269 = vmatpush1.bf16.msra.mxu0 %v2268_v34  ;;  %v106_v54 = vld [vmem:[#allocation2 + $0x120] sm:$0xff]  ;;  %v2314_v56 = vpack.c.bf16 %v109_v49, %v105_v48  ;;  %v108_v57 = vld [vmem:[#allocation2 + $0x130] sm:$0xff]  ;;  %v111_v58 = vld [vmem:[#allocation2 + $0x148] sm:$0xff] }
  0x20   :  { %2309 = vmatpush1.bf16.msra.mxu1 %v2308_v38  ;;  %2271 = vmatprep.subr.bf16.mxu0 %v2270_v39  ;;  %v115_v59 = vld [vmem:[#allocation2 + $0x168] sm:$0xff]  ;;  %v113_v60 = vld [vmem:[#allocation2 + $0x158] sm:$0xff]  ;;  %v2276_v62 = vpack.c.bf16 %v106_v54, %v102_v53  ;;  %v2316_v63 = vpack.c.bf16 %v108_v57, %v104_v55  ;;  %v110_v1 = vld [vmem:[#allocation2 + $0x140] sm:$0xff] }
  0x21   :  { %2311 = vmatprep.subr.bf16.mxu1 %v2310_v43  ;;  %v117_v61 = vld [vmem:[#allocation2 + $0x178] sm:$0xff]  ;;  %v2278_v0 = vpack.c.bf16 %v115_v59, %v111_v58  ;;  %v114_v2 = vld [vmem:[#allocation2 + $0x160] sm:$0xff]  ;;  %v112_v3 = vld [vmem:[#allocation2 + $0x150] sm:$0xff] }
  0x22   :  { %v2318_v4 = vpack.c.bf16 %v117_v61, %v113_v60  ;;  %v116_v5 = vld [vmem:[#allocation2 + $0x170] sm:$0xff]  ;;  %v119_v6 = vld [vmem:[#allocation2 + $0x188] sm:$0xff]  ;;  %v121_v8 = vld [vmem:[#allocation2 + $0x198] sm:$0xff]  ;;  %v2280_v10 = vpack.c.bf16 %v114_v2, %v110_v1 }
  0x23   :  { %2273 = vmatpush1.bf16.msra.mxu0 %v2272_v50  ;;  %v123_v7 = vld [vmem:[#allocation2 + $0x1a8] sm:$0xff]  ;;  %v125_v9 = vld [vmem:[#allocation2 + $0x1b8] sm:$0xff]  ;;  %v2320_v11 = vpack.c.bf16 %v116_v5, %v112_v3  ;;  %v118_v13 = vld [vmem:[#allocation2 + $0x180] sm:$0xff] }
  0x24   :  { %2313 = vmatpush1.bf16.msra.mxu1 %v2312_v51  ;;  %2275 = vmatprep.subr.bf16.mxu0 %v2274_v52  ;;  %v2282_v12 = vpack.c.bf16 %v123_v7, %v119_v6  ;;  %v122_v14 = vld [vmem:[#allocation2 + $0x1a0] sm:$0xff]  ;;  %v120_v15 = vld [vmem:[#allocation2 + $0x190] sm:$0xff]  ;;  %v2322_v16 = vpack.c.bf16 %v125_v9, %v121_v8  ;;  %v127_v18 = vld [vmem:[#allocation2 + $0x1c8] sm:$0xff] }
  0x25   :  { %2315 = vmatprep.subr.bf16.mxu1 %v2314_v56  ;;  %v124_v17 = vld [vmem:[#allocation2 + $0x1b0] sm:$0xff]  ;;  %v131_v19 = vld [vmem:[#allocation2 + $0x1e8] sm:$0xff]  ;;  %v129_v20 = vld [vmem:[#allocation2 + $0x1d8] sm:$0xff]  ;;  %v2284_v22 = vpack.c.bf16 %v122_v14, %v118_v13 }
  0x26   :  { %v133_v21 = vld [vmem:[#allocation2 + $0x1f8] sm:$0xff]  ;;  %v2324_v23 = vpack.c.bf16 %v124_v17, %v120_v15  ;;  %v2286_v24 = vpack.c.bf16 %v131_v19, %v127_v18  ;;  %v126_v25 = vld [vmem:[#allocation2 + $0x1c0] sm:$0xff]  ;;  %v128_v27 = vld [vmem:[#allocation2 + $0x1d0] sm:$0xff] }
  0x27   :  { %2277 = vmatpush1.bf16.msra.mxu0 %v2276_v62  ;;  %v130_v26 = vld [vmem:[#allocation2 + $0x1e0] sm:$0xff]  ;;  %v2326_v28 = vpack.c.bf16 %v133_v21, %v129_v20  ;;  %v132_v29 = vld [vmem:[#allocation2 + $0x1f0] sm:$0xff]  ;;  %v135_v30 = vld [vmem:[#allocation2 + $0x208] sm:$0xff] }
  0x28   :  { %2317 = vmatpush1.bf16.msra.mxu1 %v2316_v63  ;;  %2279 = vmatprep.subr.bf16.mxu0 %v2278_v0  ;;  %v139_v31 = vld [vmem:[#allocation2 + $0x228] sm:$0xff]  ;;  %v137_v32 = vld [vmem:[#allocation2 + $0x218] sm:$0xff]  ;;  %v2288_v35 = vpack.c.bf16 %v130_v26, %v126_v25  ;;  %v2328_v36 = vpack.c.bf16 %v132_v29, %v128_v27  ;;  %v134_v38 = vld [vmem:[#allocation2 + $0x200] sm:$0xff] }
  0x29   :  { %2319 = vmatprep.subr.bf16.mxu1 %v2318_v4  ;;  %v141_v33 = vld [vmem:[#allocation2 + $0x238] sm:$0xff]  ;;  %v47_v34 = vld [vmem:[%s4586_s0 + $0x8] sm:$0xff]  ;;  %v2290_v37 = vpack.c.bf16 %v139_v31, %v135_v30  ;;  %v138_v39 = vld [vmem:[#allocation2 + $0x220] sm:$0xff] }
  0x2a   :  { %1947 = vmatprep.mubr.msk.f32.mxu0 %vm154_vm0, %v47_v34  ;;  %v136_v40 = vld [vmem:[#allocation2 + $0x210] sm:$0xff]  ;;  %v2330_v41 = vpack.c.bf16 %v141_v33, %v137_v32  ;;  %v143_v43 = vld [vmem:[#allocation2 + $0x248] sm:$0xff]  ;;  %1959 = vmatprep.mubr.msk.f32.mxu1 %vm154_vm0, %v47_v34  ;;  %v145_v45 = vld [vmem:[#allocation2 + $0x258] sm:$0xff]  ;;  %v2292_v47 = vpack.c.bf16 %v138_v39, %v134_v38 }
  0x2b   :  { %2281 = vmatpush1.bf16.msra.mxu0 %v2280_v10  ;;  %v140_v42 = vld [vmem:[#allocation2 + $0x230] sm:$0xff]  ;;  %v147_v44 = vld [vmem:[#allocation2 + $0x268] sm:$0xff]  ;;  %v149_v46 = vld [vmem:[#allocation2 + $0x278] sm:$0xff] }
  0x2c   :  { %2321 = vmatpush1.bf16.msra.mxu1 %v2320_v11  ;;  %2283 = vmatprep.subr.bf16.mxu0 %v2282_v12  ;;  %v2332_v48 = vpack.c.bf16 %v140_v42, %v136_v40  ;;  %v2294_v49 = vpack.c.bf16 %v147_v44, %v143_v43  ;;  %v142_v50 = vld [vmem:[#allocation2 + $0x240] sm:$0xff]  ;;  %v2334_v52 = vpack.c.bf16 %v149_v46, %v145_v45  ;;  %v144_v53 = vld [vmem:[#allocation2 + $0x250] sm:$0xff]  ;;  %v151_v57 = vld [vmem:[#allocation2 + $0x288] sm:$0xff] }
  0x2d   :  { %2323 = vmatprep.subr.bf16.mxu1 %v2322_v16  ;;  %v146_v51 = vld [vmem:[#allocation2 + $0x260] sm:$0xff]  ;;  %v148_v54 = vld [vmem:[#allocation2 + $0x270] sm:$0xff]  ;;  %v153_v58 = vld [vmem:[#allocation2 + $0x298] sm:$0xff] }
  0x2e   :  { %v2296_v55 = vpack.c.bf16 %v146_v51, %v142_v50  ;;  %v2336_v56 = vpack.c.bf16 %v148_v54, %v144_v53  ;;  %v150_v59 = vld [vmem:[#allocation2 + $0x280] sm:$0xff]  ;;  %v152_v60 = vld [vmem:[#allocation2 + $0x290] sm:$0xff]  ;;  %v533_v61 = vld [vmem:[%s4589_s3 + $0x8] sm:$0xff] }
  0x2f   :  { %2285 = vmatpush1.bf16.msra.mxu0 %v2284_v22  ;;  %v537_v62 = vld [vmem:[%s4589_s3 + $0x28] sm:$0xff]  ;;  %v535_v63 = vld [vmem:[%s4589_s3 + $0x18] sm:$0xff]  ;;  %v532_v1 = vld [vmem:[%s4589_s3] sm:$0xff] }
  0x30   :  { %2325 = vmatpush1.bf16.msra.mxu1 %v2324_v23  ;;  %2287 = vmatprep.subr.bf16.mxu0 %v2286_v24  ;;  %v539_v0 = vld [vmem:[%s4589_s3 + $0x38] sm:$0xff]  ;;  %v536_v2 = vld [vmem:[%s4589_s3 + $0x20] sm:$0xff]  ;;  %v534_v4 = vld [vmem:[%s4589_s3 + $0x10] sm:$0xff]  ;;  %v2338_v7 = vpack.c.bf16 %v537_v62, %v533_v61 }
  0x31   :  { %2327 = vmatprep.subr.bf16.mxu1 %v2326_v28  ;;  %v46_v3 = vld [vmem:[%s4586_s0] sm:$0xff]  ;;  %v538_v5 = vld [vmem:[%s4589_s3 + $0x30] sm:$0xff]  ;;  %v49_v6 = vld [vmem:[%s4586_s0 + $0x18] sm:$0xff]  ;;  %v2530_v8 = vpack.c.bf16 %v539_v0, %v535_v63  ;;  %v2340_v9 = vpack.c.bf16 %v536_v2, %v532_v1 }
  0x32   :  { %v541_v10 = vld [vmem:[%s4589_s3 + $0x48] sm:$0xff]  ;;  %v543_v12 = vld [vmem:[%s4589_s3 + $0x58] sm:$0xff]  ;;  %v2532_v13 = vpack.c.bf16 %v538_v5, %v534_v4  ;;  %v540_v15 = vld [vmem:[%s4589_s3 + $0x40] sm:$0xff] }
  0x33   :  { %2289 = vmatpush1.bf16.msra.mxu0 %v2288_v35  ;;  %v545_v11 = vld [vmem:[%s4589_s3 + $0x68] sm:$0xff]  ;;  %v547_v14 = vld [vmem:[%s4589_s3 + $0x78] sm:$0xff]  ;;  %v544_v16 = vld [vmem:[%s4589_s3 + $0x60] sm:$0xff] }
  0x34   :  { %2329 = vmatpush1.bf16.msra.mxu1 %v2328_v36  ;;  %2291 = vmatprep.subr.bf16.mxu0 %v2290_v37  ;;  %v48_v17 = vld [vmem:[%s4586_s0 + $0x10] sm:$0xff]  ;;  %v51_v20 = vld [vmem:[%s4586_s0 + $0x28] sm:$0xff]  ;;  %v2342_v21 = vpack.c.bf16 %v545_v11, %v541_v10  ;;  %v2534_v22 = vpack.c.bf16 %v547_v14, %v543_v12  ;;  %v2344_v23 = vpack.c.bf16 %v544_v16, %v540_v15  ;;  %v551_v26 = vld [vmem:[%s4589_s3 + $0x98] sm:$0xff] }
  0x35   :  { %2331 = vmatprep.subr.bf16.mxu1 %v2330_v41  ;;  %v542_v18 = vld [vmem:[%s4589_s3 + $0x50] sm:$0xff]  ;;  %v549_v24 = vld [vmem:[%s4589_s3 + $0x88] sm:$0xff]  ;;  %v555_v28 = vld [vmem:[%s4589_s3 + $0xb8] sm:$0xff] }
  0x36   :  { %v546_v19 = vld [vmem:[%s4589_s3 + $0x70] sm:$0xff]  ;;  %v553_v25 = vld [vmem:[%s4589_s3 + $0xa8] sm:$0xff]  ;;  %v548_v29 = vld [vmem:[%s4589_s3 + $0x80] sm:$0xff]  ;;  %v2538_v36 = vpack.c.bf16 %v555_v28, %v551_v26 }
  0x37   :  { %2293 = vmatpush1.bf16.msra.mxu0 %v2292_v47  ;;  %v2536_v27 = vpack.c.bf16 %v546_v19, %v542_v18  ;;  %v552_v30 = vld [vmem:[%s4589_s3 + $0xa0] sm:$0xff]  ;;  %v550_v32 = vld [vmem:[%s4589_s3 + $0x90] sm:$0xff]  ;;  %v53_v34 = vld [vmem:[%s4586_s0 + $0x38] sm:$0xff]  ;;  %v2346_v35 = vpack.c.bf16 %v553_v25, %v549_v24 }
  0x38   :  { %2333 = vmatpush1.bf16.msra.mxu1 %v2332_v48  ;;  %2295 = vmatprep.subr.bf16.mxu0 %v2294_v49  ;;  %v50_v31 = vld [vmem:[%s4586_s0 + $0x20] sm:$0xff]  ;;  %v554_v33 = vld [vmem:[%s4589_s3 + $0xb0] sm:$0xff]  ;;  %v2348_v37 = vpack.c.bf16 %v552_v30, %v548_v29  ;;  %v557_v38 = vld [vmem:[%s4589_s3 + $0xc8] sm:$0xff] }
  0x39   :  { %2335 = vmatprep.subr.bf16.mxu1 %v2334_v52  ;;  %v561_v39 = vld [vmem:[%s4589_s3 + $0xe8] sm:$0xff]  ;;  %v559_v40 = vld [vmem:[%s4589_s3 + $0xd8] sm:$0xff]  ;;  %v2540_v41 = vpack.c.bf16 %v554_v33, %v550_v32  ;;  %v556_v43 = vld [vmem:[%s4589_s3 + $0xc0] sm:$0xff] }
  0x3a   :  { %v563_v42 = vld [vmem:[%s4589_s3 + $0xf8] sm:$0xff]  ;;  %v560_v44 = vld [vmem:[%s4589_s3 + $0xe0] sm:$0xff]  ;;  %v52_v45 = vld [vmem:[%s4586_s0 + $0x30] sm:$0xff]  ;;  %v2350_v49 = vpack.c.bf16 %v561_v39, %v557_v38 }
  0x3b   :  { %2297 = vmatpush1.bf16.msra.mxu0 %v2296_v55  ;;  %v558_v46 = vld [vmem:[%s4589_s3 + $0xd0] sm:$0xff]  ;;  %v55_v48 = vld [vmem:[%s4586_s0 + $0x48] sm:$0xff]  ;;  %v2542_v50 = vpack.c.bf16 %v563_v42, %v559_v40  ;;  %v2352_v51 = vpack.c.bf16 %v560_v44, %v556_v43  ;;  %v567_v54 = vld [vmem:[%s4589_s3 + $0x118] sm:$0xff] }
  0x3c   :  { %2337 = vmatpush1.bf16.msra.mxu1 %v2336_v56  ;;  %231 = vmatprep.subr.mxu0 %v151_v57  ;;  %v562_v47 = vld [vmem:[%s4589_s3 + $0xf0] sm:$0xff]  ;;  %v565_v52 = vld [vmem:[%s4589_s3 + $0x108] sm:$0xff]  ;;  %v571_v56 = vld [vmem:[%s4589_s3 + $0x138] sm:$0xff] }
  0x3d   :  { %368 = vmatprep.subr.mxu1 %v153_v58  ;;  %v569_v53 = vld [vmem:[%s4589_s3 + $0x128] sm:$0xff]  ;;  %v2544_v55 = vpack.c.bf16 %v562_v47, %v558_v46  ;;  %v564_v57 = vld [vmem:[%s4589_s3 + $0x100] sm:$0xff]  ;;  %v570_v61 = vld [vmem:[%s4589_s3 + $0x130] sm:$0xff]  ;;  %v2546_v0 = vpack.c.bf16 %v571_v56, %v567_v54 }
  0x3e   :  { %v568_v58 = vld [vmem:[%s4589_s3 + $0x120] sm:$0xff]  ;;  %v57_v62 = vld [vmem:[%s4586_s0 + $0x58] sm:$0xff]  ;;  %v2354_v63 = vpack.c.bf16 %v569_v53, %v565_v52  ;;  %v573_v2 = vld [vmem:[%s4589_s3 + $0x148] sm:$0xff] }
  0x3f   :  { %232 = vmatpush1.msra.mxu0 %v150_v59  ;;  %v54_v59 = vld [vmem:[%s4586_s0 + $0x40] sm:$0xff]  ;;  %v2356_v1 = vpack.c.bf16 %v568_v58, %v564_v57  ;;  %v575_v4 = vld [vmem:[%s4589_s3 + $0x158] sm:$0xff]  ;;  %v574_v10 = vld [vmem:[%s4589_s3 + $0x150] sm:$0xff] }
  0x40   :  { %369 = vmatpush1.msra.mxu1 %v152_v60  ;;  %256 = vmatmul.mubr.f32.vlgmr.msra.gmra.mrb[0].mxu0 %v46_v3  ;;  %v566_v60 = vld [vmem:[%s4589_s3 + $0x110] sm:$0xff]  ;;  %v59_v12 = vld [vmem:[%s4586_s0 + $0x68] sm:$0xff]  ;;  %v583_v18 = vld [vmem:[%s4589_s3 + $0x198] sm:$0xff] }
  0x41   :  { %393 = vmatmul.mubr.f32.vlgmr.msra.gmra.mrb[0].mxu1 %v46_v3  ;;  %1948 = vmatprep.mubr.msk.f32.mxu0 %vm154_vm0, %v49_v6  ;;  %v577_v3 = vld [vmem:[%s4589_s3 + $0x168] sm:$0xff]  ;;  %v2548_v5 = vpack.c.bf16 %v570_v61, %v566_v60  ;;  %v578_v11 = vld [vmem:[%s4589_s3 + $0x170] sm:$0xff]  ;;  %v61_v26 = vld [vmem:[%s4586_s0 + $0x78] sm:$0xff] }
  0x42   :  { %1960 = vmatprep.mubr.msk.f32.mxu1 %vm154_vm0, %v49_v6  ;;  %2339 = vmatprep.subr.bf16.mxu0 %v2338_v7  ;;  %v579_v6 = vld [vmem:[%s4589_s3 + $0x178] sm:$0xff]  ;;  %v572_v7 = vld [vmem:[%s4589_s3 + $0x140] sm:$0xff]  ;;  %v581_v16 = vld [vmem:[%s4589_s3 + $0x188] sm:$0xff]  ;;  %v2552_v19 = vpack.c.bf16 %v578_v11, %v574_v10 }
  0x43   :  { %2531 = vmatprep.subr.bf16.mxu1 %v2530_v8  ;;  %2341 = vmatpush1.bf16.msra.mxu0 %v2340_v9  ;;  %v576_v8 = vld [vmem:[%s4589_s3 + $0x160] sm:$0xff]  ;;  %v56_v9 = vld [vmem:[%s4586_s0 + $0x50] sm:$0xff]  ;;  %v2550_v14 = vpack.c.bf16 %v579_v6, %v575_v4  ;;  %v589_v30 = vld [vmem:[%s4589_s3 + $0x1c8] sm:$0xff] }
  0x44   :  { %262 = vmatmul.mubr.f32.gmra.mrb[2].mxu0 %v48_v17  ;;  %2533 = vmatpush1.bf16.msra.mxu1 %v2532_v13  ;;  %v2358_v13 = vpack.c.bf16 %v577_v3, %v573_v2  ;;  %v2360_v15 = vpack.c.bf16 %v576_v8, %v572_v7  ;;  %v582_v24 = vld [vmem:[%s4589_s3 + $0x190] sm:$0xff]  ;;  %v591_v32 = vld [vmem:[%s4589_s3 + $0x1d8] sm:$0xff]  ;;  %v63_v40 = vld [vmem:[%s4586_s0 + $0x88] sm:$0xff] }
  0x45   :  { %399 = vmatmul.mubr.f32.gmra.mrb[2].mxu1 %v48_v17  ;;  %1949 = vmatprep.mubr.msk.f32.mxu0 %vm154_vm0, %v51_v20  ;;  %v585_v17 = vld [vmem:[%s4589_s3 + $0x1a8] sm:$0xff]  ;;  %v586_v25 = vld [vmem:[%s4589_s3 + $0x1b0] sm:$0xff]  ;;  %v65_v46 = vld [vmem:[%s4586_s0 + $0x98] sm:$0xff] }
  0x46   :  { %1961 = vmatprep.mubr.msk.f32.mxu1 %vm154_vm0, %v51_v20  ;;  %2343 = vmatprep.subr.bf16.mxu0 %v2342_v21  ;;  %v587_v20 = vld [vmem:[%s4589_s3 + $0x1b8] sm:$0xff]  ;;  %v580_v21 = vld [vmem:[%s4589_s3 + $0x180] sm:$0xff]  ;;  %v2556_v33 = vpack.c.bf16 %v586_v25, %v582_v24  ;;  %v590_v38 = vld [vmem:[%s4589_s3 + $0x1d0] sm:$0xff] }
  0x47   :  { %2535 = vmatprep.subr.bf16.mxu1 %v2534_v22  ;;  %2345 = vmatpush1.bf16.msra.mxu0 %v2344_v23  ;;  %v584_v22 = vld [vmem:[%s4589_s3 + $0x1a0] sm:$0xff]  ;;  %v2554_v28 = vpack.c.bf16 %v587_v20, %v583_v18  ;;  %v594_v39 = vld [vmem:[%s4589_s3 + $0x1f0] sm:$0xff]  ;;  %v597_v52 = vld [vmem:[%s4589_s3 + $0x208] sm:$0xff] }
  0x48   :  { %268 = vmatmul.mubr.f32.gmra.mrb[4].mxu0 %v50_v31  ;;  %2537 = vmatpush1.bf16.msra.mxu1 %v2536_v27  ;;  %v58_v23 = vld [vmem:[%s4586_s0 + $0x60] sm:$0xff]  ;;  %v2362_v27 = vpack.c.bf16 %v585_v17, %v581_v16  ;;  %v2364_v29 = vpack.c.bf16 %v584_v22, %v580_v21  ;;  %v2560_v44 = vpack.c.bf16 %v594_v39, %v590_v38  ;;  %v64_v47 = vld [vmem:[%s4586_s0 + $0x90] sm:$0xff]  ;;  %v601_v53 = vld [vmem:[%s4589_s3 + $0x228] sm:$0xff] }
  0x49   :  { %405 = vmatmul.mubr.f32.gmra.mrb[4].mxu1 %v50_v31  ;;  %1950 = vmatprep.mubr.msk.f32.mxu0 %vm154_vm0, %v53_v34  ;;  %v593_v31 = vld [vmem:[%s4589_s3 + $0x1e8] sm:$0xff]  ;;  %v599_v54 = vld [vmem:[%s4589_s3 + $0x218] sm:$0xff]  ;;  %v596_v57 = vld [vmem:[%s4589_s3 + $0x200] sm:$0xff] }
  0x4a   :  { %1962 = vmatprep.mubr.msk.f32.mxu1 %vm154_vm0, %v53_v34  ;;  %2347 = vmatprep.subr.bf16.mxu0 %v2346_v35  ;;  %v595_v34 = vld [vmem:[%s4589_s3 + $0x1f8] sm:$0xff]  ;;  %v588_v35 = vld [vmem:[%s4589_s3 + $0x1c0] sm:$0xff]  ;;  %v598_v61 = vld [vmem:[%s4589_s3 + $0x210] sm:$0xff] }
  0x4b   :  { %2539 = vmatprep.subr.bf16.mxu1 %v2538_v36  ;;  %2349 = vmatpush1.bf16.msra.mxu0 %v2348_v37  ;;  %v592_v36 = vld [vmem:[%s4589_s3 + $0x1e0] sm:$0xff]  ;;  %v60_v37 = vld [vmem:[%s4586_s0 + $0x70] sm:$0xff]  ;;  %v2558_v42 = vpack.c.bf16 %v595_v34, %v591_v32  ;;  %v603_v56 = vld [vmem:[%s4589_s3 + $0x238] sm:$0xff] }
  0x4c   :  { %274 = vmatmul.mubr.f32.gmra.mrb[6].mxu0 %v52_v45  ;;  %2541 = vmatpush1.bf16.msra.mxu1 %v2540_v41  ;;  %v2366_v41 = vpack.c.bf16 %v593_v31, %v589_v30  ;;  %v2368_v43 = vpack.c.bf16 %v592_v36, %v588_v35  ;;  %v600_v58 = vld [vmem:[%s4589_s3 + $0x220] sm:$0xff]  ;;  %v607_v2 = vld [vmem:[%s4589_s3 + $0x258] sm:$0xff]  ;;  %v606_v8 = vld [vmem:[%s4589_s3 + $0x250] sm:$0xff] }
  0x4d   :  { %411 = vmatmul.mubr.f32.gmra.mrb[6].mxu1 %v52_v45  ;;  %1951 = vmatprep.mubr.msk.f32.mxu0 %vm154_vm0, %v55_v48  ;;  %v62_v45 = vld [vmem:[%s4586_s0 + $0x80] sm:$0xff]  ;;  %v2372_v60 = vpack.c.bf16 %v600_v58, %v596_v57  ;;  %v611_v4 = vld [vmem:[%s4589_s3 + $0x278] sm:$0xff]  ;;  %v614_v21 = vld [vmem:[%s4589_s3 + $0x290] sm:$0xff] }
  0x4e   :  { %1963 = vmatprep.mubr.msk.f32.mxu1 %vm154_vm0, %v55_v48  ;;  %2351 = vmatprep.subr.bf16.mxu0 %v2350_v49  ;;  %v67_v48 = vld [vmem:[%s4586_s0 + $0xa8] sm:$0xff]  ;;  %v66_v49 = vld [vmem:[%s4586_s0 + $0xa0] sm:$0xff]  ;;  %v2566_v6 = vpack.c.bf16 %v611_v4, %v607_v2  ;;  %v619_v16 = vld [vmem:[%s4589_s3 + $0x2b8] sm:$0xff] }
  0x4f   :  { %2543 = vmatprep.subr.bf16.mxu1 %v2542_v50  ;;  %2353 = vmatpush1.bf16.msra.mxu0 %v2352_v51  ;;  %v69_v50 = vld [vmem:[%s4586_s0 + $0xb8] sm:$0xff]  ;;  %v68_v51 = vld [vmem:[%s4586_s0 + $0xb0] sm:$0xff]  ;;  %v608_v7 = vld [vmem:[%s4589_s3 + $0x260] sm:$0xff] }
  0x50   :  { %280 = vmatmul.mubr.f32.gmra.mrb[8].mxu0 %v54_v59  ;;  %2545 = vmatpush1.bf16.msra.mxu1 %v2544_v55  ;;  %v2370_v55 = vpack.c.bf16 %v601_v53, %v597_v52  ;;  %v612_v17 = vld [vmem:[%s4589_s3 + $0x280] sm:$0xff]  ;;  %v618_v22 = vld [vmem:[%s4589_s3 + $0x2b0] sm:$0xff]  ;;  %v621_v24 = vld [vmem:[%s4589_s3 + $0x2c8] sm:$0xff] }
  0x51   :  { %417 = vmatmul.mubr.f32.gmra.mrb[8].mxu1 %v54_v59  ;;  %1952 = vmatprep.mubr.msk.f32.mxu0 %vm154_vm0, %v57_v62  ;;  %v2562_v59 = vpack.c.bf16 %v603_v56, %v599_v54  ;;  %v616_v18 = vld [vmem:[%s4589_s3 + $0x2a0] sm:$0xff]  ;;  %v625_v25 = vld [vmem:[%s4589_s3 + $0x2e8] sm:$0xff]  ;;  %v626_v34 = vld [vmem:[%s4589_s3 + $0x2f0] sm:$0xff] }
  0x52   :  { %1964 = vmatprep.mubr.msk.f32.mxu1 %vm154_vm0, %v57_v62  ;;  %2355 = vmatprep.subr.bf16.mxu0 %v2354_v63  ;;  %v602_v62 = vld [vmem:[%s4589_s3 + $0x230] sm:$0xff]  ;;  %v2380_v20 = vpack.c.bf16 %v616_v18, %v612_v17  ;;  %v624_v30 = vld [vmem:[%s4589_s3 + $0x2e0] sm:$0xff]  ;;  %v629_v36 = vld [vmem:[%s4589_s3 + $0x308] sm:$0xff] }
  0x53   :  { %2547 = vmatprep.subr.bf16.mxu1 %v2546_v0  ;;  %2357 = vmatpush1.bf16.msra.mxu0 %v2356_v1  ;;  %v2564_v63 = vpack.c.bf16 %v602_v62, %v598_v61  ;;  %v605_v0 = vld [vmem:[%s4589_s3 + $0x248] sm:$0xff]  ;;  %v631_v38 = vld [vmem:[%s4589_s3 + $0x318] sm:$0xff]  ;;  %v636_v53 = vld [vmem:[%s4589_s3 + $0x340] sm:$0xff] }
  0x54   :  { %286 = vmatmul.mubr.f32.gmra.mrb[10].mxu0 %v56_v9  ;;  %2549 = vmatpush1.bf16.msra.mxu1 %v2548_v5  ;;  %v609_v1 = vld [vmem:[%s4589_s3 + $0x268] sm:$0xff]  ;;  %v604_v5 = vld [vmem:[%s4589_s3 + $0x240] sm:$0xff]  ;;  %v643_v52 = vld [vmem:[%s4589_s3 + $0x378] sm:$0xff] }
  0x55   :  { %423 = vmatmul.mubr.f32.gmra.mrb[10].mxu1 %v56_v9  ;;  %1953 = vmatprep.mubr.msk.f32.mxu0 %vm154_vm0, %v59_v12  ;;  %v2374_v3 = vpack.c.bf16 %v609_v1, %v605_v0  ;;  %v610_v9 = vld [vmem:[%s4589_s3 + $0x270] sm:$0xff]  ;;  %v2376_v10 = vpack.c.bf16 %v608_v7, %v604_v5  ;;  %v640_v54 = vld [vmem:[%s4589_s3 + $0x360] sm:$0xff]  ;;  %v649_v61 = vld [vmem:[%s4589_s3 + $0x3a8] sm:$0xff] }
  0x56   :  { %1965 = vmatprep.mubr.msk.f32.mxu1 %vm154_vm0, %v59_v12  ;;  %2359 = vmatprep.subr.bf16.mxu0 %v2358_v13  ;;  %v2568_v11 = vpack.c.bf16 %v610_v9, %v606_v8  ;;  %v613_v12 = vld [vmem:[%s4589_s3 + $0x288] sm:$0xff]  ;;  %v2392_v56 = vpack.c.bf16 %v640_v54, %v636_v53  ;;  %v638_v57 = vld [vmem:[%s4589_s3 + $0x350] sm:$0xff]  ;;  %v647_v62 = vld [vmem:[%s4589_s3 + $0x398] sm:$0xff] }
  0x57   :  { %2551 = vmatprep.subr.bf16.mxu1 %v2550_v14  ;;  %2361 = vmatpush1.bf16.msra.mxu0 %v2360_v15  ;;  %v617_v13 = vld [vmem:[%s4589_s3 + $0x2a8] sm:$0xff]  ;;  %v615_v14 = vld [vmem:[%s4589_s3 + $0x298] sm:$0xff]  ;;  %v642_v58 = vld [vmem:[%s4589_s3 + $0x370] sm:$0xff] }
  0x58   :  { %292 = vmatmul.mubr.f32.gmra.mrb[12].mxu0 %v58_v23  ;;  %2553 = vmatpush1.bf16.msra.mxu1 %v2552_v19  ;;  %v2378_v15 = vpack.c.bf16 %v617_v13, %v613_v12  ;;  %v2570_v19 = vpack.c.bf16 %v619_v16, %v615_v14  ;;  %v651_v0 = vld [vmem:[%s4589_s3 + $0x3b8] sm:$0xff]  ;;  %v644_v1 = vld [vmem:[%s4589_s3 + $0x380] sm:$0xff]  ;;  %v646_v5 = vld [vmem:[%s4589_s3 + $0x390] sm:$0xff] }
  0x59   :  { %429 = vmatmul.mubr.f32.gmra.mrb[12].mxu1 %v58_v23  ;;  %1954 = vmatprep.mubr.msk.f32.mxu0 %vm154_vm0, %v61_v26  ;;  %v2572_v23 = vpack.c.bf16 %v618_v22, %v614_v21  ;;  %v648_v2 = vld [vmem:[%s4589_s3 + $0x3a0] sm:$0xff]  ;;  %v653_v8 = vld [vmem:[%s4589_s3 + $0x3c8] sm:$0xff]  ;;  %v659_v12 = vld [vmem:[%s4589_s3 + $0x3f8] sm:$0xff] }
  0x5a   :  { %1966 = vmatprep.mubr.msk.f32.mxu1 %vm154_vm0, %v61_v26  ;;  %2363 = vmatprep.subr.bf16.mxu0 %v2362_v27  ;;  %v623_v26 = vld [vmem:[%s4589_s3 + $0x2d8] sm:$0xff]  ;;  %v2382_v27 = vpack.c.bf16 %v625_v25, %v621_v24  ;;  %v2396_v4 = vpack.c.bf16 %v648_v2, %v644_v1  ;;  %v657_v9 = vld [vmem:[%s4589_s3 + $0x3e8] sm:$0xff]  ;;  %v652_v13 = vld [vmem:[%s4589_s3 + $0x3c0] sm:$0xff] }
  0x5b   :  { %2555 = vmatprep.subr.bf16.mxu1 %v2554_v28  ;;  %2365 = vmatpush1.bf16.msra.mxu0 %v2364_v29  ;;  %v627_v28 = vld [vmem:[%s4589_s3 + $0x2f8] sm:$0xff]  ;;  %v620_v29 = vld [vmem:[%s4589_s3 + $0x2c0] sm:$0xff]  ;;  %v654_v17 = vld [vmem:[%s4589_s3 + $0x3d0] sm:$0xff] }
  0x5c   :  { %298 = vmatmul.mubr.f32.gmra.mrb[14].mxu0 %v60_v37  ;;  %2557 = vmatpush1.bf16.msra.mxu1 %v2556_v33  ;;  %v2574_v31 = vpack.c.bf16 %v627_v28, %v623_v26  ;;  %v2384_v32 = vpack.c.bf16 %v624_v30, %v620_v29  ;;  %v622_v33 = vld [vmem:[%s4589_s3 + $0x2d0] sm:$0xff]  ;;  %v656_v14 = vld [vmem:[%s4589_s3 + $0x3e0] sm:$0xff]  ;;  %v665_v21 = vld [vmem:[%s4589_s3 + $0x428] sm:$0xff] }
  0x5d   :  { %435 = vmatmul.mubr.f32.gmra.mrb[14].mxu1 %v60_v37  ;;  %1955 = vmatprep.mubr.msk.f32.mxu0 %vm154_vm0, %v63_v40  ;;  %v2576_v35 = vpack.c.bf16 %v626_v34, %v622_v33  ;;  %v633_v37 = vld [vmem:[%s4589_s3 + $0x328] sm:$0xff]  ;;  %v2400_v16 = vpack.c.bf16 %v656_v14, %v652_v13  ;;  %v658_v18 = vld [vmem:[%s4589_s3 + $0x3f0] sm:$0xff]  ;;  %v663_v22 = vld [vmem:[%s4589_s3 + $0x418] sm:$0xff] }
  0x5e   :  { %1967 = vmatprep.mubr.msk.f32.mxu1 %vm154_vm0, %v63_v40  ;;  %2367 = vmatprep.subr.bf16.mxu0 %v2366_v41  ;;  %v2386_v39 = vpack.c.bf16 %v633_v37, %v629_v36  ;;  %v635_v40 = vld [vmem:[%s4589_s3 + $0x338] sm:$0xff]  ;;  %v628_v41 = vld [vmem:[%s4589_s3 + $0x300] sm:$0xff] }
  0x5f   :  { %2559 = vmatprep.subr.bf16.mxu1 %v2558_v42  ;;  %2369 = vmatpush1.bf16.msra.mxu0 %v2368_v43  ;;  %v632_v42 = vld [vmem:[%s4589_s3 + $0x320] sm:$0xff]  ;;  %v2578_v43 = vpack.c.bf16 %v635_v40, %v631_v38  ;;  %v667_v24 = vld [vmem:[%s4589_s3 + $0x438] sm:$0xff] }
  0x60   :  { %304 = vmatmul.mubr.f32.gmra.mrb[16].mxu0 %v62_v45  ;;  %2561 = vmatpush1.bf16.msra.mxu1 %v2560_v44  ;;  %v2388_v44 = vpack.c.bf16 %v632_v42, %v628_v41  ;;  %v2594_v25 = vpack.c.bf16 %v667_v24, %v663_v22  ;;  %v669_v24 = vld [vmem:[%s4589_s3 + $0x448] sm:$0xff] }
  0x61   :  { %441 = vmatmul.mubr.f32.gmra.mrb[16].mxu1 %v62_v45  ;;  %1956 = vmatprep.mubr.msk.f32.mxu0 %vm154_vm0, %v65_v46  ;;  %v630_v45 = vld [vmem:[%s4589_s3 + $0x310] sm:$0xff] }
  0x62   :  { %1968 = vmatprep.mubr.msk.f32.mxu1 %vm154_vm0, %v65_v46  ;;  %2371 = vmatprep.subr.bf16.mxu0 %v2370_v55  ;;  %v634_v46 = vld [vmem:[%s4589_s3 + $0x330] sm:$0xff] }
  0x63   :  { %2563 = vmatprep.subr.bf16.mxu1 %v2562_v59  ;;  %2373 = vmatpush1.bf16.msra.mxu0 %v2372_v60  ;;  %v2584_v59 = vpack.c.bf16 %v642_v58, %v638_v57  ;;  %v645_v60 = vld [vmem:[%s4589_s3 + $0x388] sm:$0xff] }
  0x64   :  { %310 = vmatmul.mubr.f32.gmra.mrb[18].mxu0 %v64_v47  ;;  %2565 = vmatpush1.bf16.msra.mxu1 %v2564_v63  ;;  %v2394_v63 = vpack.c.bf16 %v649_v61, %v645_v60 }
  0x65   :  { %447 = vmatmul.mubr.f32.gmra.mrb[18].mxu1 %v64_v47  ;;  %1957 = vmatprep.mubr.msk.f32.mxu0 %vm154_vm0, %v67_v48  ;;  %v2580_v47 = vpack.c.bf16 %v634_v46, %v630_v45 }
  0x66   :  { %1969 = vmatprep.mubr.msk.f32.mxu1 %vm154_vm0, %v67_v48  ;;  %2375 = vmatprep.subr.bf16.mxu0 %v2374_v3  ;;  %v637_v48 = vld [vmem:[%s4589_s3 + $0x348] sm:$0xff]  ;;  %v2586_v3 = vpack.c.bf16 %v651_v0, %v647_v62  ;;  %v3462_v0 = vld [vmem:[%s4588_s2] ss:$0 sm:$0xff] }
  0x67   :  { %2567 = vmatprep.subr.bf16.mxu1 %v2566_v6  ;;  %2377 = vmatpush1.bf16.msra.mxu0 %v2376_v10  ;;  %v650_v6 = vld [vmem:[%s4589_s3 + $0x3b0] sm:$0xff]  ;;  %v655_v10 = vld [vmem:[%s4589_s3 + $0x3d8] sm:$0xff] }
  0x68   :  { %316 = vmatmul.mubr.f32.gmra.mrb[20].mxu0 %v66_v49  ;;  %2569 = vmatpush1.bf16.msra.mxu1 %v2568_v11  ;;  %v2588_v7 = vpack.c.bf16 %v650_v6, %v646_v5  ;;  %v2398_v11 = vpack.c.bf16 %v657_v9, %v653_v8 }
  0x69   :  { %453 = vmatmul.mubr.f32.gmra.mrb[20].mxu1 %v66_v49  ;;  %1958 = vmatprep.mubr.msk.f32.mxu0 %vm154_vm0, %v69_v50  ;;  %v641_v49 = vld [vmem:[%s4589_s3 + $0x368] sm:$0xff] }
  0x6a   :  { %1970 = vmatprep.mubr.msk.f32.mxu1 %vm154_vm0, %v69_v50  ;;  %2379 = vmatprep.subr.bf16.mxu0 %v2378_v15  ;;  %v639_v50 = vld [vmem:[%s4589_s3 + $0x358] sm:$0xff]  ;;  %v2590_v15 = vpack.c.bf16 %v659_v12, %v655_v10 }
  0x6b   :  { %2571 = vmatprep.subr.bf16.mxu1 %v2570_v19  ;;  %2381 = vmatpush1.bf16.msra.mxu0 %v2380_v20  ;;  %v2582_v55 = vpack.c.bf16 %v643_v52, %v639_v50  ;;  %v2592_v19 = vpack.c.bf16 %v658_v18, %v654_v17  ;;  %v661_v20 = vld [vmem:[%s4589_s3 + $0x408] sm:$0xff]  ;;  %v660_v17 = vld [vmem:[%s4589_s3 + $0x400] sm:$0xff] }
  0x6c   :  { %322 = vmatmul.mubr.f32.gmra.mrb[22].mxu0 %v68_v51  ;;  %2573 = vmatpush1.bf16.msra.mxu1 %v2572_v23  ;;  %v2402_v23 = vpack.c.bf16 %v665_v21, %v661_v20  ;;  %v664_v18 = vld [vmem:[%s4589_s3 + $0x420] sm:$0xff] }
  0x6d   :  { %459 = vmatmul.mubr.f32.gmra.mrb[22].mxu1 %v68_v51  ;;  %2383 = vmatprep.subr.bf16.mxu0 %v2382_v27  ;;  %v2390_v51 = vpack.c.bf16 %v641_v49, %v637_v48 }
  0x6e   :  { %2575 = vmatprep.subr.bf16.mxu1 %v2574_v31 }
  0x6f   :  { %2385 = vmatpush1.bf16.msra.mxu0 %v2384_v32 }
  0x70   :  { %2577 = vmatpush1.bf16.msra.mxu1 %v2576_v35  ;;  %2387 = vmatprep.subr.bf16.mxu0 %v2386_v39 }
  0x71   :  { %2579 = vmatprep.subr.bf16.mxu1 %v2578_v43 }
  0x73   :  { %2389 = vmatpush1.bf16.msra.mxu0 %v2388_v44 }
  0x74   :  { %2581 = vmatpush1.bf16.msra.mxu1 %v2580_v47  ;;  %2391 = vmatprep.subr.bf16.mxu0 %v2390_v51 }
  0x75   :  { %2583 = vmatprep.subr.bf16.mxu1 %v2582_v55 }
  0x77   :  { %2393 = vmatpush1.bf16.msra.mxu0 %v2392_v56 }
  0x78   :  { %2585 = vmatpush1.bf16.msra.mxu1 %v2584_v59  ;;  %2395 = vmatprep.subr.bf16.mxu0 %v2394_v63 }
  0x79   :  { %2587 = vmatprep.subr.bf16.mxu1 %v2586_v3 }
  0x7b   :  { %2397 = vmatpush1.bf16.msra.mxu0 %v2396_v4 }
  0x7c   :  { %2589 = vmatpush1.bf16.msra.mxu1 %v2588_v7  ;;  %2399 = vmatprep.subr.bf16.mxu0 %v2398_v11 }
  0x7d   :  { %2591 = vmatprep.subr.bf16.mxu1 %v2590_v15 }
  0x7f   :  { %2401 = vmatpush1.bf16.msra.mxu0 %v2400_v16 }
  0x80   :  { %2593 = vmatpush1.bf16.msra.mxu1 %v2592_v19  ;;  %2403 = vmatprep.subr.bf16.mxu0 %v2402_v23  ;;  %v662_v19 = vld [vmem:[%s4589_s3 + $0x410] sm:$0xff] }
  0x81   :  { %2595 = vmatprep.subr.bf16.mxu1 %v2594_v25  ;;  %v666_v23 = vld [vmem:[%s4589_s3 + $0x430] sm:$0xff]  ;;  %v673_v25 = vld [vmem:[%s4589_s3 + $0x468] sm:$0xff] }
 0x113   :  { %v257_v26 = vpop.f32.mrb[0].mxu0 }
 0x114   :  { %v394_v27 = vpop.f32.mrb[0].mxu1  ;;  %v259_v28 = vpop.f32.mrb[1].mxu0 }
 0x115   :  { %v465_v29 = vmax.f32 %v257_v26, %v259_v28  ;;  %v396_v30 = vpop.f32.mrb[1].mxu1  ;;  %v671_v28 = vld [vmem:[%s4589_s3 + $0x458] sm:$0xff] }
 0x116   :  { %v477_v31 = vmax.f32 %v394_v27, %v396_v30 }
 0x117   :  { %v263_v32 = vpop.f32.mrb[2].mxu0 }
 0x118   :  { %v489_v33 = vmax.f32 %v465_v29, %v477_v31  ;;  %v400_v34 = vpop.f32.mrb[2].mxu1  ;;  %v265_v35 = vpop.f32.mrb[3].mxu0  ;;  %v675_v29 = vld [vmem:[%s4589_s3 + $0x478] sm:$0xff]  ;;  %v2404_v31 = vpack.c.bf16 %v664_v18, %v660_v17 }
 0x119   :  { %v466_v36 = vmax.f32 %v263_v32, %v265_v35  ;;  %v402_v37 = vpop.f32.mrb[3].mxu1 }
 0x11a   :  { %v478_v38 = vmax.f32 %v400_v34, %v402_v37  ;;  %v508_v20 = vadd.f32 %v3462_v0, %v489_v33  ;;  %v2406_v37 = vpack.c.bf16 %v673_v25, %v669_v24 }
 0x11b   :  { %v269_v39 = vpop.f32.mrb[4].mxu0 }
 0x11c   :  { %v3453_v40 = vmax.f32 %v466_v36, %v478_v38  ;;  %v406_v41 = vpop.f32.mrb[4].mxu1  ;;  %v271_v42 = vpop.f32.mrb[5].mxu0  ;;  %v2596_v36 = vpack.c.bf16 %v666_v23, %v662_v19  ;;  %v668_v38 = vld [vmem:[%s4589_s3 + $0x440] sm:$0xff] }
 0x11d   :  { %v467_v43 = vmax.f32 %v269_v39, %v271_v42  ;;  %v408_v44 = vpop.f32.mrb[5].mxu1  ;;  %v672_v39 = vld [vmem:[%s4589_s3 + $0x460] sm:$0xff]  ;;  %v520_v42 = vmax.f32 %v508_v20, 0.0 }
 0x11e   :  { %v479_v45 = vmax.f32 %v406_v41, %v408_v44  ;;  %v670_v41 = vld [vmem:[%s4589_s3 + $0x450] sm:$0xff]  ;;  %v688_v23 = vld [vmem:[%s4589_s3 + $0x4e0] sm:$0xff] }
 0x11f   :  { %v275_v46 = vpop.f32.mrb[6].mxu0 }
 0x120   :  { %v3455_v47 = vmax.f32 %v467_v43, %v479_v45  ;;  %v412_v48 = vpop.f32.mrb[6].mxu1  ;;  %v277_v49 = vpop.f32.mrb[7].mxu0  ;;  %v509_v43 = vadd.f32 %v3462_v0, %v3453_v40  ;;  %v679_v40 = vld [vmem:[%s4589_s3 + $0x498] sm:$0xff] }
 0x121   :  { %v468_v50 = vmax.f32 %v275_v46, %v277_v49  ;;  %v414_v51 = vpop.f32.mrb[7].mxu1  ;;  %v2598_v46 = vpack.c.bf16 %v675_v29, %v671_v28  ;;  %v677_v49 = vld [vmem:[%s4589_s3 + $0x488] sm:$0xff]  ;;  %v686_v29 = vld [vmem:[%s4589_s3 + $0x4d0] sm:$0xff] }
 0x122   :  { %v480_v52 = vmax.f32 %v412_v48, %v414_v51  ;;  %v674_v48 = vld [vmem:[%s4589_s3 + $0x470] sm:$0xff] }
 0x123   :  { %v281_v53 = vpop.f32.mrb[8].mxu0 }
 0x124   :  { %v3457_v54 = vmax.f32 %v468_v50, %v480_v52  ;;  %v418_v55 = vpop.f32.mrb[8].mxu1  ;;  %v283_v56 = vpop.f32.mrb[9].mxu0  ;;  %v681_v50 = vld [vmem:[%s4589_s3 + $0x4a8] sm:$0xff] }
 0x125   :  { %v469_v57 = vmax.f32 %v281_v53, %v283_v56  ;;  %v420_v58 = vpop.f32.mrb[9].mxu1  ;;  %v683_v53 = vld [vmem:[%s4589_s3 + $0x4b8] sm:$0xff]  ;;  %v2408_v56 = vpack.c.bf16 %v672_v39, %v668_v38 }
 0x126   :  { %v481_v59 = vmax.f32 %v418_v55, %v420_v58 }
 0x127   :  { %v287_v60 = vpop.f32.mrb[10].mxu0 }
 0x128   :  { %v493_v61 = vmax.f32 %v469_v57, %v481_v59  ;;  %v424_v62 = vpop.f32.mrb[10].mxu1  ;;  %v289_v63 = vpop.f32.mrb[11].mxu0 }
 0x129   :  { %v470_v1 = vmax.f32 %v287_v60, %v289_v63  ;;  %v426_v2 = vpop.f32.mrb[11].mxu1  ;;  %v676_v63 = vld [vmem:[%s4589_s3 + $0x480] sm:$0xff] }
 0x12a   :  { %v3465_v3 = vadd.f32 %v3462_v0, %v493_v61  ;;  %v482_v4 = vmax.f32 %v424_v62, %v426_v2  ;;  %v2600_v61 = vpack.c.bf16 %v674_v48, %v670_v41  ;;  %v2410_v62 = vpack.c.bf16 %v681_v50, %v677_v49  ;;  %v678_v2 = vld [vmem:[%s4589_s3 + $0x490] sm:$0xff] }
 0x12b   :  { %v293_v5 = vpop.f32.mrb[12].mxu0 }
 0x12c   :  { %v494_v6 = vmax.f32 %v470_v1, %v482_v4  ;;  %v430_v7 = vpop.f32.mrb[12].mxu1  ;;  %v295_v8 = vpop.f32.mrb[13].mxu0  ;;  %v680_v1 = vld [vmem:[%s4589_s3 + $0x4a0] sm:$0xff]  ;;  %v3534_v4 = vmax.f32 %v509_v43, 0.0 }
 0x12d   :  { %v471_v9 = vmax.f32 %v293_v5, %v295_v8  ;;  %v432_v10 = vpop.f32.mrb[13].mxu1  ;;  %v510_v5 = vadd.f32 %v3462_v0, %v3455_v47  ;;  %v2602_v8 = vpack.c.bf16 %v683_v53, %v679_v40  ;;  %v692_v43 = vld [vmem:[%s4589_s3 + $0x500] sm:$0xff]  ;;  %v698_v40 = vld [vmem:[%s4589_s3 + $0x530] sm:$0xff]  ;;  %v701_v53 = vld [vmem:[%s4589_s3 + $0x548] sm:$0xff] }
 0x12e   :  { %v483_v11 = vmax.f32 %v430_v7, %v432_v10  ;;  %v3468_v12 = vadd.f32 %v3462_v0, %v494_v6  ;;  %v685_v10 = vld [vmem:[%s4589_s3 + $0x4c8] sm:$0xff] }
 0x12f   :  { %v299_v13 = vpop.f32.mrb[14].mxu0 }
 0x130   :  { %v495_v14 = vmax.f32 %v471_v9, %v483_v11  ;;  %v436_v15 = vpop.f32.mrb[14].mxu1  ;;  %v301_v16 = vpop.f32.mrb[15].mxu0  ;;  %v682_v9 = vld [vmem:[%s4589_s3 + $0x4b0] sm:$0xff]  ;;  %v689_v11 = vld [vmem:[%s4589_s3 + $0x4e8] sm:$0xff] }
 0x131   :  { %v472_v21 = vmax.f32 %v299_v13, %v301_v16  ;;  %v438_v22 = vpop.f32.mrb[15].mxu1  ;;  %v2412_v16 = vpack.c.bf16 %v680_v1, %v676_v63  ;;  %v2604_v20 = vpack.c.bf16 %v682_v9, %v678_v2  ;;  %v700_v2 = vld [vmem:[%s4589_s3 + $0x540] sm:$0xff]  ;;  %v702_v9 = vld [vmem:[%s4589_s3 + $0x550] sm:$0xff] }
 0x132   :  { %v484_v26 = vmax.f32 %v436_v15, %v438_v22  ;;  %v514_v27 = vadd.f32 %v3462_v0, %v495_v14  ;;  %v687_v14 = vld [vmem:[%s4589_s3 + $0x4d8] sm:$0xff]  ;;  %v684_v22 = vld [vmem:[%s4589_s3 + $0x4c0] sm:$0xff] }
 0x133   :  { %v305_v30 = vpop.f32.mrb[16].mxu0  ;;  %v691_v15 = vld [vmem:[%s4589_s3 + $0x4f8] sm:$0xff]  ;;  %v2416_v41 = vpack.c.bf16 %v688_v23, %v684_v22  ;;  %v717_v23 = vld [vmem:[%s4589_s3 + $0x5c8] sm:$0xff] }
 0x134   :  { %v496_v32 = vmax.f32 %v472_v21, %v484_v26  ;;  %v442_v33 = vpop.f32.mrb[16].mxu1  ;;  %v307_v34 = vpop.f32.mrb[17].mxu0  ;;  %v526_v35 = vmax.f32 %v514_v27, 0.0  ;;  %v2414_v21 = vpack.c.bf16 %v689_v11, %v685_v10  ;;  %v3566_v26 = vmax.f32 %v510_v5, 0.0  ;;  %v704_v5 = vld [vmem:[%s4589_s3 + $0x560] sm:$0xff]  ;;  %v706_v10 = vld [vmem:[%s4589_s3 + $0x570] sm:$0xff] }
 0x135   :  { %v473_v44 = vmax.f32 %v305_v30, %v307_v34  ;;  %v444_v45 = vpop.f32.mrb[17].mxu1  ;;  %v511_v27 = vadd.f32 %v3462_v0, %v3457_v54  ;;  %v2606_v28 = vpack.c.bf16 %v691_v15, %v687_v14  ;;  %v690_v30 = vld [vmem:[%s4589_s3 + $0x4f0] sm:$0xff]  ;;  %v697_v54 = vld [vmem:[%s4589_s3 + $0x528] sm:$0xff]  ;;  %v715_v14 = vld [vmem:[%s4589_s3 + $0x5b8] sm:$0xff] }
 0x136   :  { %v515_v51 = vadd.f32 %v3462_v0, %v496_v32  ;;  %v485_v52 = vmax.f32 %v442_v33, %v444_v45  ;;  %980 = vmatprep.mubr.f32.mxu0 %v526_v35  ;;  %1247 = vmatprep.mubr.f32.mxu1 %v526_v35  ;;  %v695_v35 = vld [vmem:[%s4589_s3 + $0x518] sm:$0xff]  ;;  %v709_v11 = vld [vmem:[%s4589_s3 + $0x588] sm:$0xff] }
 0x137   :  { %981 = vmatmul.mubr.f32.vlgmr.msra.gmra.mrb[24].mxu0 %v520_v42  ;;  %1248 = vmatmul.mubr.f32.vlgmr.msra.gmra.mrb[24].mxu1 %v520_v42  ;;  %v311_v55 = vpop.f32.mrb[18].mxu0  ;;  %v2608_v42 = vpack.c.bf16 %v690_v30, %v686_v29  ;;  %v3601_v49 = vmax.f32 %v511_v27, 0.0  ;;  %v723_v27 = vld [vmem:[%s4589_s3 + $0x5f8] sm:$0xff]  ;;  %v716_v30 = vld [vmem:[%s4589_s3 + $0x5c0] sm:$0xff] }
 0x138   :  { %v3523_v57 = vmax.f32 %v515_v51, 0.0  ;;  %v497_v58 = vmax.f32 %v473_v44, %v485_v52  ;;  %2405 = vmatpush1.bf16.msra.mxu0 %v2404_v31  ;;  %2597 = vmatpush1.bf16.msra.mxu1 %v2596_v36  ;;  %v448_v59 = vpop.f32.mrb[18].mxu1  ;;  %v313_v60 = vpop.f32.mrb[19].mxu0  ;;  %v693_v31 = vld [vmem:[%s4589_s3 + $0x508] sm:$0xff]  ;;  %v699_v36 = vld [vmem:[%s4589_s3 + $0x538] sm:$0xff]  ;;  %v696_v44 = vld [vmem:[%s4589_s3 + $0x520] sm:$0xff] }
 0x139   :  { %v474_v6 = vmax.f32 %v311_v55, %v313_v60  ;;  %v450_v7 = vpop.f32.mrb[19].mxu1  ;;  %2407 = vmatprep.subr.bf16.mxu0 %v2406_v37  ;;  %2599 = vmatprep.subr.bf16.mxu1 %v2598_v46  ;;  %v2418_v50 = vpack.c.bf16 %v697_v54, %v693_v31  ;;  %v2610_v51 = vpack.c.bf16 %v699_v36, %v695_v35  ;;  %v694_v52 = vld [vmem:[%s4589_s3 + $0x510] sm:$0xff]  ;;  %v707_v60 = vld [vmem:[%s4589_s3 + $0x578] sm:$0xff]  ;;  %v720_v31 = vld [vmem:[%s4589_s3 + $0x5e0] sm:$0xff] }
 0x13a   :  { %v516_v13 = vadd.f32 %v3462_v0, %v497_v58  ;;  %v486_v47 = vmax.f32 %v448_v59, %v450_v7  ;;  %986 = vmatprep.mubr.f32.mxu0 %v3523_v57  ;;  %1253 = vmatprep.mubr.f32.mxu1 %v3523_v57  ;;  %v705_v58 = vld [vmem:[%s4589_s3 + $0x568] sm:$0xff]  ;;  %v703_v59 = vld [vmem:[%s4589_s3 + $0x558] sm:$0xff]  ;;  %v2420_v63 = vpack.c.bf16 %v696_v44, %v692_v43  ;;  %v722_v54 = vld [vmem:[%s4589_s3 + $0x5f0] sm:$0xff] }
 0x13b   :  { %987 = vmatmul.mubr.f32.gmra.mrb[26].mxu0 %v3534_v4  ;;  %1254 = vmatmul.mubr.f32.gmra.mrb[26].mxu1 %v3534_v4  ;;  %v317_v17 = vpop.f32.mrb[20].mxu0  ;;  %v2612_v1 = vpack.c.bf16 %v698_v40, %v694_v52  ;;  %v2422_v7 = vpack.c.bf16 %v705_v58, %v701_v53  ;;  %v725_v35 = vld [vmem:[%s4589_s3 + $0x608] sm:$0xff]  ;;  %v724_v43 = vld [vmem:[%s4589_s3 + $0x600] sm:$0xff]  ;;  %v735_v40 = vld [vmem:[%s4589_s3 + $0x658] sm:$0xff] }
 0x13c   :  { %v3558_v18 = vmax.f32 %v516_v13, 0.0  ;;  %v498_v19 = vmax.f32 %v474_v6, %v486_v47  ;;  %2409 = vmatpush1.bf16.msra.mxu0 %v2408_v56  ;;  %2601 = vmatpush1.bf16.msra.mxu1 %v2600_v61  ;;  %v454_v24 = vpop.f32.mrb[20].mxu1  ;;  %v319_v25 = vpop.f32.mrb[21].mxu0  ;;  %v713_v13 = vld [vmem:[%s4589_s3 + $0x5a8] sm:$0xff]  ;;  %v711_v47 = vld [vmem:[%s4589_s3 + $0x598] sm:$0xff]  ;;  %v728_v44 = vld [vmem:[%s4589_s3 + $0x620] sm:$0xff] }
 0x13d   :  { %2411 = vmatprep.subr.bf16.mxu0 %v2410_v62  ;;  %2603 = vmatprep.subr.bf16.mxu1 %v2602_v8  ;;  %v475_v32 = vmax.f32 %v317_v17, %v319_v25  ;;  %v456_v33 = vpop.f32.mrb[21].mxu1  ;;  %v2614_v8 = vpack.c.bf16 %v707_v60, %v703_v59  ;;  %v2616_v17 = vpack.c.bf16 %v706_v10, %v702_v9  ;;  %v719_v25 = vld [vmem:[%s4589_s3 + $0x5d8] sm:$0xff]  ;;  %v729_v36 = vld [vmem:[%s4589_s3 + $0x628] sm:$0xff]  ;;  %v732_v58 = vld [vmem:[%s4589_s3 + $0x640] sm:$0xff] }
 0x13e   :  { %v517_v34 = vadd.f32 %v3462_v0, %v498_v19  ;;  %992 = vmatprep.mubr.f32.mxu0 %v3558_v18  ;;  %1259 = vmatprep.mubr.f32.mxu1 %v3558_v18  ;;  %v487_v37 = vmax.f32 %v454_v24, %v456_v33  ;;  %v708_v19 = vld [vmem:[%s4589_s3 + $0x580] sm:$0xff]  ;;  %v2618_v22 = vpack.c.bf16 %v715_v14, %v711_v47  ;;  %v721_v24 = vld [vmem:[%s4589_s3 + $0x5e8] sm:$0xff]  ;;  %v739_v53 = vld [vmem:[%s4589_s3 + $0x678] sm:$0xff] }
 0x13f   :  { %993 = vmatmul.mubr.f32.gmra.mrb[28].mxu0 %v3566_v26  ;;  %1260 = vmatmul.mubr.f32.gmra.mrb[28].mxu1 %v3566_v26  ;;  %v323_v38 = vpop.f32.mrb[22].mxu0  ;;  %v2622_v33 = vpack.c.bf16 %v723_v27, %v719_v25  ;;  %v737_v52 = vld [vmem:[%s4589_s3 + $0x668] sm:$0xff]  ;;  %v736_v59 = vld [vmem:[%s4589_s3 + $0x660] sm:$0xff]  ;;  %v742_v14 = vld [vmem:[%s4589_s3 + $0x690] sm:$0xff] }
 0x140   :  { %v3593_v39 = vmax.f32 %v517_v34, 0.0  ;;  %2413 = vmatpush1.bf16.msra.mxu0 %v2412_v16  ;;  %2605 = vmatpush1.bf16.msra.mxu1 %v2604_v20  ;;  %v499_v45 = vmax.f32 %v475_v32, %v487_v37  ;;  %v460_v46 = vpop.f32.mrb[22].mxu1  ;;  %v325_v48 = vpop.f32.mrb[23].mxu0  ;;  %v2424_v16 = vpack.c.bf16 %v704_v5, %v700_v2  ;;  %v712_v20 = vld [vmem:[%s4589_s3 + $0x5a0] sm:$0xff]  ;;  %v2430_v32 = vpack.c.bf16 %v721_v24, %v717_v23  ;;  %v718_v34 = vld [vmem:[%s4589_s3 + $0x5d0] sm:$0xff]  ;;  %v727_v37 = vld [vmem:[%s4589_s3 + $0x618] sm:$0xff] }
 0x141   :  { %2415 = vmatprep.subr.bf16.mxu0 %v2414_v21  ;;  %2607 = vmatprep.subr.bf16.mxu1 %v2606_v28  ;;  %v476_v55 = vmax.f32 %v323_v38, %v325_v48  ;;  %v462_v56 = vpop.f32.mrb[23].mxu1  ;;  %v2426_v21 = vpack.c.bf16 %v713_v13, %v709_v11  ;;  %v2428_v28 = vpack.c.bf16 %v712_v20, %v708_v19  ;;  %v731_v38 = vld [vmem:[%s4589_s3 + $0x638] sm:$0xff]  ;;  %v726_v48 = vld [vmem:[%s4589_s3 + $0x610] sm:$0xff]  ;;  %v741_v2 = vld [vmem:[%s4589_s3 + $0x688] sm:$0xff] }
 0x142   :  { %998 = vmatprep.mubr.f32.mxu0 %v3593_v39  ;;  %1265 = vmatprep.mubr.f32.mxu1 %v3593_v39  ;;  %v3624_v61 = vadd.f32 %v3462_v0, %v499_v45  ;;  %v488_v62 = vmax.f32 %v460_v46, %v462_v56  ;;  %v2434_v45 = vpack.c.bf16 %v729_v36, %v725_v35  ;;  %v745_v5 = vld [vmem:[%s4589_s3 + $0x6a8] sm:$0xff]  ;;  %v740_v10 = vld [vmem:[%s4589_s3 + $0x680] sm:$0xff]  ;;  %v751_v20 = vld [vmem:[%s4589_s3 + $0x6d8] sm:$0xff] }
 0x143   :  { %999 = vmatmul.mubr.f32.gmra.mrb[30].mxu0 %v3601_v49  ;;  %1266 = vmatmul.mubr.f32.gmra.mrb[30].mxu1 %v3601_v49  ;;  %v2626_v46 = vpack.c.bf16 %v731_v38, %v727_v37  ;;  %v744_v11 = vld [vmem:[%s4589_s3 + $0x6a0] sm:$0xff]  ;;  %v2442_v13 = vpack.c.bf16 %v745_v5, %v741_v2  ;;  %v753_v19 = vld [vmem:[%s4589_s3 + $0x6e8] sm:$0xff]  ;;  %v750_v27 = vld [vmem:[%s4589_s3 + $0x6d0] sm:$0xff] }
 0x144   :  { %2417 = vmatpush1.bf16.msra.mxu0 %v2416_v41  ;;  %2609 = vmatpush1.bf16.msra.mxu1 %v2608_v42  ;;  %v500_v6 = vmax.f32 %v476_v55, %v488_v62  ;;  %v2432_v41 = vpack.c.bf16 %v720_v31, %v716_v30  ;;  %v2624_v42 = vpack.c.bf16 %v722_v54, %v718_v34  ;;  %v752_v23 = vld [vmem:[%s4589_s3 + $0x6e0] sm:$0xff]  ;;  %v761_v30 = vld [vmem:[%s4589_s3 + $0x728] sm:$0xff]  ;;  %v759_v31 = vld [vmem:[%s4589_s3 + $0x718] sm:$0xff] }
 0x145   :  { %2419 = vmatprep.subr.bf16.mxu0 %v2418_v50  ;;  %2611 = vmatprep.subr.bf16.mxu1 %v2610_v51  ;;  %v730_v50 = vld [vmem:[%s4589_s3 + $0x630] sm:$0xff]  ;;  %v733_v51 = vld [vmem:[%s4589_s3 + $0x648] sm:$0xff]  ;;  %v2436_v55 = vpack.c.bf16 %v728_v44, %v724_v43  ;;  %v2630_v62 = vpack.c.bf16 %v739_v53, %v735_v40  ;;  %v756_v54 = vld [vmem:[%s4589_s3 + $0x700] sm:$0xff] }
 0x146   :  { %1069 = vmatprep.mubr.f32.mxu0 %v3523_v57  ;;  %1336 = vmatprep.mubr.f32.mxu1 %v3523_v57  ;;  %v3655_v15 = vadd.f32 %v3462_v0, %v500_v6  ;;  %v710_v0 = vld [vmem:[%s4589_s3 + $0x590] sm:$0xff]  ;;  %v2628_v56 = vpack.c.bf16 %v730_v50, %v726_v48  ;;  %v2438_v60 = vpack.c.bf16 %v737_v52, %v733_v51  ;;  %v743_v6 = vld [vmem:[%s4589_s3 + $0x698] sm:$0xff]  ;;  %v760_v35 = vld [vmem:[%s4589_s3 + $0x720] sm:$0xff] }
 0x147   :  { %v714_v57 = vld [vmem:[%s4589_s3 + $0x5b0] sm:$0xff]  ;;  %v769_v43 = vld [vmem:[%s4589_s3 + $0x768] sm:$0xff]  ;;  %v767_v44 = vld [vmem:[%s4589_s3 + $0x758] sm:$0xff] }
 0x148   :  { %2421 = vmatpush1.bf16.msra.mxu0 %v2420_v63  ;;  %2613 = vmatpush1.bf16.msra.mxu1 %v2612_v1  ;;  %v2620_v29 = vpack.c.bf16 %v714_v57, %v710_v0  ;;  %v734_v63 = vld [vmem:[%s4589_s3 + $0x650] sm:$0xff]  ;;  %v748_v57 = vld [vmem:[%s4589_s3 + $0x6c0] sm:$0xff] }
 0x149   :  { %2423 = vmatprep.subr.bf16.mxu0 %v2422_v7  ;;  %2615 = vmatprep.subr.bf16.mxu1 %v2614_v8  ;;  %v738_v1 = vld [vmem:[%s4589_s3 + $0x670] sm:$0xff]  ;;  %v747_v7 = vld [vmem:[%s4589_s3 + $0x6b8] sm:$0xff]  ;;  %v2440_v8 = vpack.c.bf16 %v736_v59, %v732_v58  ;;  %v764_v50 = vld [vmem:[%s4589_s3 + $0x740] sm:$0xff] }
 0x14a   :  { %v2632_v9 = vpack.c.bf16 %v738_v1, %v734_v63  ;;  %v2634_v47 = vpack.c.bf16 %v747_v7, %v743_v6  ;;  %v758_v38 = vld [vmem:[%s4589_s3 + $0x710] sm:$0xff]  ;;  %v768_v51 = vld [vmem:[%s4589_s3 + $0x760] sm:$0xff]  ;;  %v777_v58 = vld [vmem:[%s4589_s3 + $0x7a8] sm:$0xff] }
 0x14b   :  { %v766_v53 = vld [vmem:[%s4589_s3 + $0x750] sm:$0xff]  ;;  %v775_v59 = vld [vmem:[%s4589_s3 + $0x798] sm:$0xff]  ;;  %v772_v1 = vld [vmem:[%s4589_s3 + $0x780] sm:$0xff] }
 0x14c   :  { %2425 = vmatpush1.bf16.msra.mxu0 %v2424_v16  ;;  %2617 = vmatpush1.bf16.msra.mxu1 %v2616_v17  ;;  %v746_v16 = vld [vmem:[%s4589_s3 + $0x6b0] sm:$0xff]  ;;  %v749_v17 = vld [vmem:[%s4589_s3 + $0x6c8] sm:$0xff]  ;;  %v776_v2 = vld [vmem:[%s4589_s3 + $0x7a0] sm:$0xff] }
 0x14d   :  { %2427 = vmatprep.subr.bf16.mxu0 %v2426_v21  ;;  %2619 = vmatprep.subr.bf16.mxu1 %v2618_v22  ;;  %v755_v21 = vld [vmem:[%s4589_s3 + $0x6f8] sm:$0xff]  ;;  %v2444_v22 = vpack.c.bf16 %v744_v11, %v740_v10  ;;  %v2636_v0 = vpack.c.bf16 %v746_v16, %v742_v14  ;;  %v2446_v24 = vpack.c.bf16 %v753_v19, %v749_v17  ;;  %v774_v7 = vld [vmem:[%s4589_s3 + $0x790] sm:$0xff]  ;;  %v785_v10 = vld [vmem:[%s4589_s3 + $0x7e8] sm:$0xff] }
 0x14e   :  { %v2638_v25 = vpack.c.bf16 %v755_v21, %v751_v20  ;;  %v783_v11 = vld [vmem:[%s4589_s3 + $0x7d8] sm:$0xff]  ;;  %v780_v16 = vld [vmem:[%s4589_s3 + $0x7c0] sm:$0xff]  ;;  %v782_v21 = vld [vmem:[%s4589_s3 + $0x7d0] sm:$0xff] }
 0x14f   :  { %v784_v17 = vld [vmem:[%s4589_s3 + $0x7e0] sm:$0xff] }
 0x150   :  { %2429 = vmatpush1.bf16.msra.mxu0 %v2428_v28  ;;  %2621 = vmatpush1.bf16.msra.mxu1 %v2620_v29  ;;  %v754_v28 = vld [vmem:[%s4589_s3 + $0x6f0] sm:$0xff]  ;;  %v757_v29 = vld [vmem:[%s4589_s3 + $0x708] sm:$0xff] }
 0x151   :  { %2431 = vmatprep.subr.bf16.mxu0 %v2430_v32  ;;  %2623 = vmatprep.subr.bf16.mxu1 %v2622_v33  ;;  %v763_v32 = vld [vmem:[%s4589_s3 + $0x738] sm:$0xff]  ;;  %v2448_v33 = vpack.c.bf16 %v752_v23, %v748_v57  ;;  %v2640_v34 = vpack.c.bf16 %v754_v28, %v750_v27  ;;  %v2450_v36 = vpack.c.bf16 %v761_v30, %v757_v29  ;;  %v793_v57 = vld [vmem:[%s4589_s3 + $0x828] sm:$0xff]  ;;  %v788_v30 = vld [vmem:[%s4589_s3 + $0x800] sm:$0xff] }
 0x152   :  { %v2642_v37 = vpack.c.bf16 %v763_v32, %v759_v31  ;;  %v791_v23 = vld [vmem:[%s4589_s3 + $0x818] sm:$0xff]  ;;  %v792_v31 = vld [vmem:[%s4589_s3 + $0x820] sm:$0xff]  ;;  %v790_v32 = vld [vmem:[%s4589_s3 + $0x810] sm:$0xff] }
 0x154   :  { %2433 = vmatpush1.bf16.msra.mxu0 %v2432_v41  ;;  %2625 = vmatpush1.bf16.msra.mxu1 %v2624_v42  ;;  %v762_v41 = vld [vmem:[%s4589_s3 + $0x730] sm:$0xff]  ;;  %v765_v42 = vld [vmem:[%s4589_s3 + $0x748] sm:$0xff] }
 0x155   :  { %2435 = vmatprep.subr.bf16.mxu0 %v2434_v45  ;;  %2627 = vmatprep.subr.bf16.mxu1 %v2626_v46  ;;  %v771_v45 = vld [vmem:[%s4589_s3 + $0x778] sm:$0xff]  ;;  %v2452_v46 = vpack.c.bf16 %v760_v35, %v756_v54  ;;  %v2644_v48 = vpack.c.bf16 %v762_v41, %v758_v38  ;;  %v2454_v52 = vpack.c.bf16 %v769_v43, %v765_v42  ;;  %v801_v54 = vld [vmem:[%s4589_s3 + $0x868] sm:$0xff]  ;;  %v796_v41 = vld [vmem:[%s4589_s3 + $0x840] sm:$0xff] }
 0x156   :  { %v2646_v40 = vpack.c.bf16 %v771_v45, %v767_v44  ;;  %v799_v35 = vld [vmem:[%s4589_s3 + $0x858] sm:$0xff]  ;;  %v800_v42 = vld [vmem:[%s4589_s3 + $0x860] sm:$0xff]  ;;  %v798_v45 = vld [vmem:[%s4589_s3 + $0x850] sm:$0xff] }
 0x158   :  { %2437 = vmatpush1.bf16.msra.mxu0 %v2436_v55  ;;  %2629 = vmatpush1.bf16.msra.mxu1 %v2628_v56  ;;  %v770_v55 = vld [vmem:[%s4589_s3 + $0x770] sm:$0xff]  ;;  %v773_v56 = vld [vmem:[%s4589_s3 + $0x788] sm:$0xff] }
 0x159   :  { %2439 = vmatprep.subr.bf16.mxu0 %v2438_v60  ;;  %2631 = vmatprep.subr.bf16.mxu1 %v2630_v62  ;;  %v779_v60 = vld [vmem:[%s4589_s3 + $0x7b8] sm:$0xff]  ;;  %v2456_v62 = vpack.c.bf16 %v768_v51, %v764_v50  ;;  %v2648_v63 = vpack.c.bf16 %v770_v55, %v766_v53  ;;  %v2458_v5 = vpack.c.bf16 %v777_v58, %v773_v56  ;;  %v809_v50 = vld [vmem:[%s4589_s3 + $0x8a8] sm:$0xff]  ;;  %v804_v53 = vld [vmem:[%s4589_s3 + $0x880] sm:$0xff] }
 0x15a   :  { %v2650_v6 = vpack.c.bf16 %v779_v60, %v775_v59  ;;  %v807_v51 = vld [vmem:[%s4589_s3 + $0x898] sm:$0xff]  ;;  %v808_v55 = vld [vmem:[%s4589_s3 + $0x8a0] sm:$0xff]  ;;  %v806_v59 = vld [vmem:[%s4589_s3 + $0x890] sm:$0xff] }
 0x15b   :  { %v810_v60 = vld [vmem:[%s4589_s3 + $0x8b0] sm:$0xff] }
 0x15c   :  { %2441 = vmatpush1.bf16.msra.mxu0 %v2440_v8  ;;  %2633 = vmatpush1.bf16.msra.mxu1 %v2632_v9  ;;  %v778_v8 = vld [vmem:[%s4589_s3 + $0x7b0] sm:$0xff]  ;;  %v781_v9 = vld [vmem:[%s4589_s3 + $0x7c8] sm:$0xff] }
 0x15d   :  { %2443 = vmatprep.subr.bf16.mxu0 %v2442_v13  ;;  %2635 = vmatprep.subr.bf16.mxu1 %v2634_v47  ;;  %v787_v13 = vld [vmem:[%s4589_s3 + $0x7f8] sm:$0xff]  ;;  %v2460_v47 = vpack.c.bf16 %v776_v2, %v772_v1  ;;  %v2652_v14 = vpack.c.bf16 %v778_v8, %v774_v7  ;;  %v2462_v19 = vpack.c.bf16 %v785_v10, %v781_v9  ;;  %v812_v8 = vld [vmem:[%s4589_s3 + $0x8c0] sm:$0xff] }
 0x15e   :  { %v2654_v20 = vpack.c.bf16 %v787_v13, %v783_v11  ;;  %v815_v1 = vld [vmem:[%s4589_s3 + $0x8d8] sm:$0xff]  ;;  %v2668_v7 = vpack.c.bf16 %v810_v60, %v806_v59  ;;  %v816_v9 = vld [vmem:[%s4589_s3 + $0x8e0] sm:$0xff]  ;;  %v814_v11 = vld [vmem:[%s4589_s3 + $0x8d0] sm:$0xff] }
 0x15f   :  { %v819_v2 = vld [vmem:[%s4589_s3 + $0x8f8] sm:$0xff]  ;;  %v818_v13 = vld [vmem:[%s4589_s3 + $0x8f0] sm:$0xff]  ;;  %v844_v59 = vld [vmem:[%s4589_s3 + $0x9c0] sm:$0xff] }
 0x160   :  { %2445 = vmatpush1.bf16.msra.mxu0 %v2444_v22  ;;  %2637 = vmatpush1.bf16.msra.mxu1 %v2636_v0  ;;  %v786_v22 = vld [vmem:[%s4589_s3 + $0x7f0] sm:$0xff]  ;;  %v789_v0 = vld [vmem:[%s4589_s3 + $0x808] sm:$0xff]  ;;  %v2670_v10 = vpack.c.bf16 %v819_v2, %v815_v1  ;;  %v848_v60 = vld [vmem:[%s4589_s3 + $0x9e0] sm:$0xff] }
 0x161   :  { %2447 = vmatprep.subr.bf16.mxu0 %v2446_v24  ;;  %2639 = vmatprep.subr.bf16.mxu1 %v2638_v25  ;;  %v795_v24 = vld [vmem:[%s4589_s3 + $0x838] sm:$0xff]  ;;  %v2464_v25 = vpack.c.bf16 %v784_v17, %v780_v16  ;;  %v2656_v27 = vpack.c.bf16 %v786_v22, %v782_v21  ;;  %v2466_v28 = vpack.c.bf16 %v793_v57, %v789_v0  ;;  %v820_v22 = vld [vmem:[%s4589_s3 + $0x900] sm:$0xff]  ;;  %v822_v57 = vld [vmem:[%s4589_s3 + $0x910] sm:$0xff] }
 0x162   :  { %v2658_v29 = vpack.c.bf16 %v795_v24, %v791_v23  ;;  %v823_v16 = vld [vmem:[%s4589_s3 + $0x918] sm:$0xff]  ;;  %v2672_v21 = vpack.c.bf16 %v818_v13, %v814_v11  ;;  %v824_v0 = vld [vmem:[%s4589_s3 + $0x920] sm:$0xff]  ;;  %v826_v24 = vld [vmem:[%s4589_s3 + $0x930] sm:$0xff] }
 0x163   :  { %v827_v17 = vld [vmem:[%s4589_s3 + $0x938] sm:$0xff]  ;;  %v850_v1 = vld [vmem:[%s4589_s3 + $0x9f0] sm:$0xff]  ;;  %v853_v2 = vld [vmem:[%s4589_s3 + $0xa08] sm:$0xff] }
 0x164   :  { %2449 = vmatpush1.bf16.msra.mxu0 %v2448_v33  ;;  %2641 = vmatpush1.bf16.msra.mxu1 %v2640_v34  ;;  %v794_v33 = vld [vmem:[%s4589_s3 + $0x830] sm:$0xff]  ;;  %v797_v34 = vld [vmem:[%s4589_s3 + $0x848] sm:$0xff]  ;;  %v2674_v23 = vpack.c.bf16 %v827_v17, %v823_v16  ;;  %v852_v11 = vld [vmem:[%s4589_s3 + $0xa00] sm:$0xff] }
 0x165   :  { %2451 = vmatprep.subr.bf16.mxu0 %v2450_v36  ;;  %2643 = vmatprep.subr.bf16.mxu1 %v2642_v37  ;;  %v803_v36 = vld [vmem:[%s4589_s3 + $0x878] sm:$0xff]  ;;  %v2468_v37 = vpack.c.bf16 %v792_v31, %v788_v30  ;;  %v2660_v38 = vpack.c.bf16 %v794_v33, %v790_v32  ;;  %v2470_v43 = vpack.c.bf16 %v801_v54, %v797_v34  ;;  %v828_v33 = vld [vmem:[%s4589_s3 + $0x940] sm:$0xff]  ;;  %v830_v54 = vld [vmem:[%s4589_s3 + $0x950] sm:$0xff] }
 0x166   :  { %v2662_v44 = vpack.c.bf16 %v803_v36, %v799_v35  ;;  %v2484_v30 = vpack.c.bf16 %v824_v0, %v820_v22  ;;  %v2676_v31 = vpack.c.bf16 %v826_v24, %v822_v57  ;;  %v832_v34 = vld [vmem:[%s4589_s3 + $0x960] sm:$0xff]  ;;  %v837_v36 = vld [vmem:[%s4589_s3 + $0x988] sm:$0xff]  ;;  %v858_v16 = vld [vmem:[%s4589_s3 + $0xa30] sm:$0xff] }
 0x167   :  { %v856_v13 = vld [vmem:[%s4589_s3 + $0xa20] sm:$0xff]  ;;  %v861_v17 = vld [vmem:[%s4589_s3 + $0xa48] sm:$0xff]  ;;  %v867_v22 = vld [vmem:[%s4589_s3 + $0xa78] sm:$0xff] }
 0x168   :  { %2453 = vmatpush1.bf16.msra.mxu0 %v2452_v46  ;;  %2645 = vmatpush1.bf16.msra.mxu1 %v2644_v48  ;;  %v802_v46 = vld [vmem:[%s4589_s3 + $0x870] sm:$0xff]  ;;  %v805_v48 = vld [vmem:[%s4589_s3 + $0x888] sm:$0xff]  ;;  %v2500_v0 = vpack.c.bf16 %v856_v13, %v852_v11  ;;  %v864_v24 = vld [vmem:[%s4589_s3 + $0xa60] sm:$0xff] }
 0x169   :  { %2455 = vmatprep.subr.bf16.mxu0 %v2454_v52  ;;  %2647 = vmatprep.subr.bf16.mxu1 %v2646_v40  ;;  %v811_v52 = vld [vmem:[%s4589_s3 + $0x8b8] sm:$0xff]  ;;  %v2472_v40 = vpack.c.bf16 %v800_v42, %v796_v41  ;;  %v2474_v56 = vpack.c.bf16 %v809_v50, %v805_v48  ;;  %v2488_v42 = vpack.c.bf16 %v832_v34, %v828_v33  ;;  %v838_v48 = vld [vmem:[%s4589_s3 + $0x990] sm:$0xff] }
 0x16a   :  { %v2666_v58 = vpack.c.bf16 %v811_v52, %v807_v51  ;;  %v843_v41 = vld [vmem:[%s4589_s3 + $0x9b8] sm:$0xff]  ;;  %v842_v51 = vld [vmem:[%s4589_s3 + $0x9b0] sm:$0xff]  ;;  %v845_v52 = vld [vmem:[%s4589_s3 + $0x9c8] sm:$0xff] }
 0x16c   :  { %2457 = vmatpush1.bf16.msra.mxu0 %v2456_v62  ;;  %2649 = vmatpush1.bf16.msra.mxu1 %v2648_v63  ;;  %v813_v62 = vld [vmem:[%s4589_s3 + $0x8c8] sm:$0xff] }
 0x16d   :  { %2459 = vmatprep.subr.bf16.mxu0 %v2458_v5  ;;  %2651 = vmatprep.subr.bf16.mxu1 %v2650_v6  ;;  %v817_v63 = vld [vmem:[%s4589_s3 + $0x8e8] sm:$0xff]  ;;  %v3976_v5 = vmax.f32 %v3624_v61, 0.0  ;;  %v2476_v6 = vpack.c.bf16 %v808_v55, %v804_v53  ;;  %v851_v53 = vld [vmem:[%s4589_s3 + $0x9f8] sm:$0xff] }
 0x16e   :  { %v2478_v61 = vpack.c.bf16 %v817_v63, %v813_v62  ;;  %v846_v62 = vld [vmem:[%s4589_s3 + $0x9d0] sm:$0xff] }
 0x170   :  { %2461 = vmatpush1.bf16.msra.mxu0 %v2460_v47  ;;  %2653 = vmatpush1.bf16.msra.mxu1 %v2652_v14  ;;  %v821_v47 = vld [vmem:[%s4589_s3 + $0x908] sm:$0xff] }
 0x171   :  { %2463 = vmatprep.subr.bf16.mxu0 %v2462_v19  ;;  %2655 = vmatprep.subr.bf16.mxu1 %v2654_v20  ;;  %v825_v14 = vld [vmem:[%s4589_s3 + $0x928] sm:$0xff]  ;;  %v2480_v19 = vpack.c.bf16 %v816_v9, %v812_v8  ;;  %v4008_v20 = vmax.f32 %v3465_v3, 0.0  ;;  %v859_v8 = vld [vmem:[%s4589_s3 + $0xa38] sm:$0xff]  ;;  %v2496_v9 = vpack.c.bf16 %v848_v60, %v844_v59 }
 0x172   :  { %v2482_v3 = vpack.c.bf16 %v825_v14, %v821_v47  ;;  %v854_v47 = vld [vmem:[%s4589_s3 + $0xa10] sm:$0xff] }
 0x173   :  { %v2692_v57 = vpack.c.bf16 %v858_v16, %v854_v47  ;;  %v896_v16 = vld [vmem:[%s4589_s3 + $0xb60] sm:$0xff] }
 0x174   :  { %2465 = vmatpush1.bf16.msra.mxu0 %v2464_v25  ;;  %2657 = vmatpush1.bf16.msra.mxu1 %v2656_v27  ;;  %v829_v25 = vld [vmem:[%s4589_s3 + $0x948] sm:$0xff] }
 0x175   :  { %2467 = vmatprep.subr.bf16.mxu0 %v2466_v28  ;;  %2659 = vmatprep.subr.bf16.mxu1 %v2658_v29  ;;  %v833_v27 = vld [vmem:[%s4589_s3 + $0x968] sm:$0xff]  ;;  %v831_v28 = vld [vmem:[%s4589_s3 + $0x958] sm:$0xff] }
 0x176   :  { %v835_v29 = vld [vmem:[%s4589_s3 + $0x978] sm:$0xff]  ;;  %v2486_v32 = vpack.c.bf16 %v833_v27, %v829_v25  ;;  %v862_v25 = vld [vmem:[%s4589_s3 + $0xa50] sm:$0xff] }
 0x177   :  { %1070 = vmatmul.mubr.f32.vlgmr.msra.gmra.mrb[24].mxu0 %v3534_v4  ;;  %1337 = vmatmul.mubr.f32.vlgmr.msra.gmra.mrb[24].mxu1 %v3534_v4  ;;  %v2664_v4 = vpack.c.bf16 %v802_v46, %v798_v45  ;;  %v2678_v35 = vpack.c.bf16 %v835_v29, %v831_v28  ;;  %v836_v45 = vld [vmem:[%s4589_s3 + $0x980] sm:$0xff]  ;;  %v866_v28 = vld [vmem:[%s4589_s3 + $0xa70] sm:$0xff]  ;;  %v869_v29 = vld [vmem:[%s4589_s3 + $0xa88] sm:$0xff] }
 0x178   :  { %1075 = vmatprep.mubr.f32.mxu0 %v3558_v18  ;;  %2469 = vmatpush1.bf16.msra.mxu0 %v2468_v37  ;;  %v841_v37 = vld [vmem:[%s4589_s3 + $0x9a8] sm:$0xff]  ;;  %v840_v46 = vld [vmem:[%s4589_s3 + $0x9a0] sm:$0xff]  ;;  %v2696_v34 = vpack.c.bf16 %v866_v28, %v862_v25 }
 0x179   :  { %1342 = vmatprep.mubr.f32.mxu1 %v3558_v18  ;;  %2661 = vmatpush1.bf16.msra.mxu1 %v2660_v38  ;;  %v839_v38 = vld [vmem:[%s4589_s3 + $0x998] sm:$0xff]  ;;  %v2492_v55 = vpack.c.bf16 %v840_v46, %v836_v45  ;;  %v904_v28 = vld [vmem:[%s4589_s3 + $0xba0] sm:$0xff] }
 0x17a   :  { %2471 = vmatprep.subr.bf16.mxu0 %v2470_v43  ;;  %2663 = vmatprep.subr.bf16.mxu1 %v2662_v44  ;;  %v2490_v44 = vpack.c.bf16 %v841_v37, %v837_v36  ;;  %v2682_v50 = vpack.c.bf16 %v843_v41, %v839_v38  ;;  %v870_v36 = vld [vmem:[%s4589_s3 + $0xa90] sm:$0xff]  ;;  %v877_v41 = vld [vmem:[%s4589_s3 + $0xac8] sm:$0xff] }
 0x17b   :  { %1076 = vmatmul.mubr.f32.gmra.mrb[26].mxu0 %v3566_v26  ;;  %1343 = vmatmul.mubr.f32.gmra.mrb[26].mxu1 %v3566_v26  ;;  %v874_v38 = vld [vmem:[%s4589_s3 + $0xab0] sm:$0xff] }
 0x17c   :  { %1081 = vmatprep.mubr.f32.mxu0 %v3593_v39  ;;  %2473 = vmatpush1.bf16.msra.mxu0 %v2472_v40  ;;  %v849_v40 = vld [vmem:[%s4589_s3 + $0x9e8] sm:$0xff]  ;;  %v2700_v46 = vpack.c.bf16 %v874_v38, %v870_v36  ;;  %v912_v38 = vld [vmem:[%s4589_s3 + $0xbe0] sm:$0xff] }
 0x17d   :  { %1348 = vmatprep.mubr.f32.mxu1 %v3593_v39  ;;  %2665 = vmatpush1.bf16.msra.mxu1 %v2664_v4  ;;  %v847_v4 = vld [vmem:[%s4589_s3 + $0x9d8] sm:$0xff] }
 0x17e   :  { %2475 = vmatprep.subr.bf16.mxu0 %v2474_v56  ;;  %2667 = vmatprep.subr.bf16.mxu1 %v2666_v58  ;;  %v2684_v56 = vpack.c.bf16 %v842_v51, %v838_v48  ;;  %v2494_v58 = vpack.c.bf16 %v849_v40, %v845_v52  ;;  %v2686_v63 = vpack.c.bf16 %v851_v53, %v847_v4  ;;  %v880_v51 = vld [vmem:[%s4589_s3 + $0xae0] sm:$0xff]  ;;  %v878_v52 = vld [vmem:[%s4589_s3 + $0xad0] sm:$0xff]  ;;  %v885_v53 = vld [vmem:[%s4589_s3 + $0xb08] sm:$0xff] }
 0x17f   :  { %1082 = vmatmul.mubr.f32.gmra.mrb[28].mxu0 %v3601_v49  ;;  %1349 = vmatmul.mubr.f32.gmra.mrb[28].mxu1 %v3601_v49  ;;  %v882_v4 = vld [vmem:[%s4589_s3 + $0xaf0] sm:$0xff] }
 0x180   :  { %2477 = vmatpush1.bf16.msra.mxu0 %v2476_v6  ;;  %1087 = vmatprep.mubr.f32.mxu0 %v3976_v5  ;;  %v857_v6 = vld [vmem:[%s4589_s3 + $0xa28] sm:$0xff]  ;;  %v2704_v60 = vpack.c.bf16 %v882_v4, %v878_v52 }
 0x181   :  { %2669 = vmatpush1.bf16.msra.mxu1 %v2668_v7  ;;  %1354 = vmatprep.mubr.f32.mxu1 %v3976_v5  ;;  %v855_v7 = vld [vmem:[%s4589_s3 + $0xa18] sm:$0xff] }
 0x182   :  { %2479 = vmatprep.subr.bf16.mxu0 %v2478_v61  ;;  %2671 = vmatprep.subr.bf16.mxu1 %v2670_v10  ;;  %v2688_v61 = vpack.c.bf16 %v850_v1, %v846_v62  ;;  %v2498_v10 = vpack.c.bf16 %v857_v6, %v853_v2  ;;  %v2690_v14 = vpack.c.bf16 %v859_v8, %v855_v7  ;;  %v888_v1 = vld [vmem:[%s4589_s3 + $0xb20] sm:$0xff]  ;;  %v886_v2 = vld [vmem:[%s4589_s3 + $0xb10] sm:$0xff]  ;;  %v893_v8 = vld [vmem:[%s4589_s3 + $0xb48] sm:$0xff] }
 0x183   :  { %1088 = vmatmul.mubr.f32.gmra.mrb[30].mxu0 %v4008_v20  ;;  %1355 = vmatmul.mubr.f32.gmra.mrb[30].mxu1 %v4008_v20  ;;  %v890_v7 = vld [vmem:[%s4589_s3 + $0xb30] sm:$0xff] }
 0x184   :  { %2481 = vmatpush1.bf16.msra.mxu0 %v2480_v19  ;;  %1158 = vmatprep.mubr.f32.mxu0 %v3558_v18  ;;  %v865_v19 = vld [vmem:[%s4589_s3 + $0xa68] sm:$0xff]  ;;  %v2708_v13 = vpack.c.bf16 %v890_v7, %v886_v2  ;;  %v1483_v7 = vld [vmem:[%s4591_s5 + $0x30] sm:$0xff] }
 0x185   :  { %2673 = vmatpush1.bf16.msra.mxu1 %v2672_v21  ;;  %1425 = vmatprep.mubr.f32.mxu1 %v3558_v18  ;;  %v834_v18 = vld [vmem:[%s4589_s3 + $0x970] sm:$0xff]  ;;  %v863_v21 = vld [vmem:[%s4589_s3 + $0xa58] sm:$0xff] }
 0x186   :  { %2483 = vmatprep.subr.bf16.mxu0 %v2482_v3  ;;  %2675 = vmatprep.subr.bf16.mxu1 %v2674_v23  ;;  %v2680_v43 = vpack.c.bf16 %v834_v18, %v830_v54  ;;  %v2502_v3 = vpack.c.bf16 %v865_v19, %v861_v17  ;;  %v860_v23 = vld [vmem:[%s4589_s3 + $0xa40] sm:$0xff]  ;;  %v2694_v27 = vpack.c.bf16 %v867_v22, %v863_v21  ;;  %v894_v17 = vld [vmem:[%s4589_s3 + $0xb50] sm:$0xff]  ;;  %v901_v22 = vld [vmem:[%s4589_s3 + $0xb88] sm:$0xff] }
 0x187   :  { %v2504_v33 = vpack.c.bf16 %v864_v24, %v860_v23  ;;  %v872_v18 = vld [vmem:[%s4589_s3 + $0xaa0] sm:$0xff]  ;;  %v898_v21 = vld [vmem:[%s4589_s3 + $0xb70] sm:$0xff] }
 0x188   :  { %2485 = vmatpush1.bf16.msra.mxu0 %v2484_v30  ;;  %v873_v30 = vld [vmem:[%s4589_s3 + $0xaa8] sm:$0xff]  ;;  %v2712_v24 = vpack.c.bf16 %v898_v21, %v894_v17  ;;  %v1984_v21 = vld [vmem:[%s4591_s5 + $0xd8] sm:$0xff] }
 0x189   :  { %2677 = vmatpush1.bf16.msra.mxu1 %v2676_v31  ;;  %2487 = vmatprep.subr.bf16.mxu0 %v2486_v32  ;;  %v871_v31 = vld [vmem:[%s4589_s3 + $0xa98] sm:$0xff]  ;;  %v2506_v54 = vpack.c.bf16 %v873_v30, %v869_v29  ;;  %v902_v29 = vld [vmem:[%s4589_s3 + $0xb90] sm:$0xff] }
 0x18a   :  { %2679 = vmatprep.subr.bf16.mxu1 %v2678_v35  ;;  %v875_v32 = vld [vmem:[%s4589_s3 + $0xab8] sm:$0xff]  ;;  %v868_v35 = vld [vmem:[%s4589_s3 + $0xa80] sm:$0xff] }
 0x18b   :  { %v2698_v37 = vpack.c.bf16 %v875_v32, %v871_v31  ;;  %v2508_v45 = vpack.c.bf16 %v872_v18, %v868_v35  ;;  %v906_v31 = vld [vmem:[%s4589_s3 + $0xbb0] sm:$0xff]  ;;  %v909_v32 = vld [vmem:[%s4589_s3 + $0xbc8] sm:$0xff] }
 0x18c   :  { %2489 = vmatpush1.bf16.msra.mxu0 %v2488_v42  ;;  %v881_v42 = vld [vmem:[%s4589_s3 + $0xae8] sm:$0xff]  ;;  %v2716_v18 = vpack.c.bf16 %v906_v31, %v902_v29  ;;  %v1988_v31 = vld [vmem:[%s4591_s5 + $0xf8] sm:$0xff] }
 0x18d   :  { %2681 = vmatpush1.bf16.msra.mxu1 %v2680_v43  ;;  %2491 = vmatprep.subr.bf16.mxu0 %v2490_v44  ;;  %v879_v43 = vld [vmem:[%s4589_s3 + $0xad8] sm:$0xff]  ;;  %v2510_v48 = vpack.c.bf16 %v881_v42, %v877_v41  ;;  %v910_v42 = vld [vmem:[%s4589_s3 + $0xbd0] sm:$0xff] }
 0x18e   :  { %2683 = vmatprep.subr.bf16.mxu1 %v2682_v50  ;;  %v883_v44 = vld [vmem:[%s4589_s3 + $0xaf8] sm:$0xff]  ;;  %v876_v50 = vld [vmem:[%s4589_s3 + $0xac0] sm:$0xff] }
 0x18f   :  { %v2702_v40 = vpack.c.bf16 %v883_v44, %v879_v43  ;;  %v2512_v59 = vpack.c.bf16 %v880_v51, %v876_v50  ;;  %v914_v43 = vld [vmem:[%s4589_s3 + $0xbf0] sm:$0xff]  ;;  %v1973_v50 = vld [vmem:[%s4591_s5 + $0x80] sm:$0xff]  ;;  %v1974_v51 = vld [vmem:[%s4591_s5 + $0x88] sm:$0xff] }
 0x190   :  { %2493 = vmatpush1.bf16.msra.mxu0 %v2492_v55  ;;  %v889_v55 = vld [vmem:[%s4589_s3 + $0xb28] sm:$0xff]  ;;  %v2723_v4 = vpack.c.bf16 %v1974_v51, %v1973_v50 }
 0x191   :  { %2685 = vmatpush1.bf16.msra.mxu1 %v2684_v56  ;;  %2495 = vmatprep.subr.bf16.mxu0 %v2494_v58  ;;  %v887_v56 = vld [vmem:[%s4589_s3 + $0xb18] sm:$0xff]  ;;  %v2514_v62 = vpack.c.bf16 %v889_v55, %v885_v53  ;;  %v1479_v53 = vld [vmem:[%s4591_s5 + $0x10] sm:$0xff] }
 0x192   :  { %2687 = vmatprep.subr.bf16.mxu1 %v2686_v63  ;;  %v891_v58 = vld [vmem:[%s4589_s3 + $0xb38] sm:$0xff]  ;;  %v884_v63 = vld [vmem:[%s4589_s3 + $0xb00] sm:$0xff] }
 0x193   :  { %v2706_v6 = vpack.c.bf16 %v891_v58, %v887_v56  ;;  %v2516_v11 = vpack.c.bf16 %v888_v1, %v884_v63  ;;  %v1480_v55 = vld [vmem:[%s4591_s5 + $0x18] sm:$0xff]  ;;  %v1975_v56 = vld [vmem:[%s4591_s5 + $0x90] sm:$0xff]  ;;  %v1482_v63 = vld [vmem:[%s4591_s5 + $0x28] sm:$0xff]  ;;  %v531_v1 = vmax.f32 %v3655_v15, 0.0 }
 0x194   :  { %2497 = vmatpush1.bf16.msra.mxu0 %v2496_v9  ;;  %v897_v9 = vld [vmem:[%s4589_s3 + $0xb68] sm:$0xff]  ;;  %v1976_v58 = vld [vmem:[%s4591_s5 + $0x98] sm:$0xff]  ;;  %v1979_v15 = vld [vmem:[%s4591_s5 + $0xb0] sm:$0xff] }
 0x195   :  { %2689 = vmatpush1.bf16.msra.mxu1 %v2688_v61  ;;  %2499 = vmatprep.subr.bf16.mxu0 %v2498_v10  ;;  %v895_v61 = vld [vmem:[%s4589_s3 + $0xb58] sm:$0xff]  ;;  %v2518_v47 = vpack.c.bf16 %v897_v9, %v893_v8  ;;  %v525_v8 = vmax.f32 %v3468_v12, 0.0  ;;  %v1981_v12 = vld [vmem:[%s4591_s5 + $0xc0] sm:$0xff] }
 0x196   :  { %2691 = vmatprep.subr.bf16.mxu1 %v2690_v14  ;;  %v899_v10 = vld [vmem:[%s4589_s3 + $0xb78] sm:$0xff]  ;;  %v892_v14 = vld [vmem:[%s4589_s3 + $0xb40] sm:$0xff] }
 0x197   :  { %v2710_v19 = vpack.c.bf16 %v899_v10, %v895_v61  ;;  %v2520_v23 = vpack.c.bf16 %v896_v16, %v892_v14  ;;  %v1485_v10 = vld [vmem:[%s4591_s5 + $0x40] sm:$0xff]  ;;  %v1487_v14 = vld [vmem:[%s4591_s5 + $0x50] sm:$0xff]  ;;  %v1488_v16 = vld [vmem:[%s4591_s5 + $0x58] sm:$0xff] }
 0x198   :  { %2501 = vmatpush1.bf16.msra.mxu0 %v2500_v0  ;;  %v905_v0 = vld [vmem:[%s4589_s3 + $0xba8] sm:$0xff]  ;;  %v2762_v17 = vpack.c.bf16 %v1488_v16, %v1487_v14 }
 0x199   :  { %2693 = vmatpush1.bf16.msra.mxu1 %v2692_v57  ;;  %2503 = vmatprep.subr.bf16.mxu0 %v2502_v3  ;;  %v903_v57 = vld [vmem:[%s4589_s3 + $0xb98] sm:$0xff]  ;;  %v2522_v25 = vpack.c.bf16 %v905_v0, %v901_v22  ;;  %v1489_v22 = vld [vmem:[%s4591_s5 + $0x60] sm:$0xff] }
 0x19a   :  { %2695 = vmatprep.subr.bf16.mxu1 %v2694_v27  ;;  %v907_v3 = vld [vmem:[%s4589_s3 + $0xbb8] sm:$0xff]  ;;  %v900_v27 = vld [vmem:[%s4589_s3 + $0xb80] sm:$0xff] }
 0x19b   :  { %v2714_v30 = vpack.c.bf16 %v907_v3, %v903_v57  ;;  %v2524_v35 = vpack.c.bf16 %v904_v28, %v900_v27  ;;  %v1490_v57 = vld [vmem:[%s4591_s5 + $0x68] sm:$0xff]  ;;  %v1492_v28 = vld [vmem:[%s4591_s5 + $0x78] sm:$0xff] }
 0x19c   :  { %2505 = vmatpush1.bf16.msra.mxu0 %v2504_v33  ;;  %v913_v33 = vld [vmem:[%s4589_s3 + $0xbe8] sm:$0xff]  ;;  %v2765_v3 = vpack.c.bf16 %v1490_v57, %v1489_v22  ;;  %v2012_v57 = vld [vmem:[%s4591_s5 + $0x1b8] sm:$0xff] }
 0x19d   :  { %2697 = vmatpush1.bf16.msra.mxu1 %v2696_v34  ;;  %2507 = vmatprep.subr.bf16.mxu0 %v2506_v54  ;;  %v911_v34 = vld [vmem:[%s4589_s3 + $0xbd8] sm:$0xff]  ;;  %v2526_v36 = vpack.c.bf16 %v913_v33, %v909_v32  ;;  %v2898_v33 = vmov 0.0   ;;  %v1994_v22 = vld [vmem:[%s4591_s5 + $0x128] sm:$0xff] }
 0x19e   :  { %2699 = vmatprep.subr.bf16.mxu1 %v2698_v37  ;;  %v915_v54 = vld [vmem:[%s4589_s3 + $0xbf8] sm:$0xff]  ;;  %v908_v37 = vld [vmem:[%s4589_s3 + $0xbc0] sm:$0xff] }
 0x19f   :  { %v2718_v41 = vpack.c.bf16 %v915_v54, %v911_v34  ;;  %v2528_v44 = vpack.c.bf16 %v912_v38, %v908_v37  ;;  %v4424_v38 = vld [vmem:[%s4590_s4] ss:$0 sm:$0xff] }
 0x1a0   :  { %2509 = vmatpush1.bf16.msra.mxu0 %v2508_v45  ;;  %v2720_v45 = vpack.c.bf16 %v914_v43, %v910_v42 }
 0x1a1   :  { %2701 = vmatpush1.bf16.msra.mxu1 %v2700_v46  ;;  %2511 = vmatprep.subr.bf16.mxu0 %v2510_v48  ;;  %v1477_v46 = vld [vmem:[%s4591_s5] sm:$0xff]  ;;  %v1478_v48 = vld [vmem:[%s4591_s5 + $0x8] sm:$0xff] }
 0x1a2   :  { %2703 = vmatprep.subr.bf16.mxu1 %v2702_v40  ;;  %v2747_v52 = vpack.c.bf16 %v1478_v48, %v1477_v46  ;;  %v2896_v40 = vmov 0.0|0.0   ;;  %v2006_v46 = vld [vmem:[%s4591_s5 + $0x188] sm:$0xff] }
 0x1a4   :  { %2513 = vmatpush1.bf16.msra.mxu0 %v2512_v59  ;;  %v2750_v59 = vpack.c.bf16 %v1480_v55, %v1479_v53  ;;  %v1989_v55 = vld [vmem:[%s4591_s5 + $0x100] sm:$0xff] }
 0x1a5   :  { %2705 = vmatpush1.bf16.msra.mxu1 %v2704_v60  ;;  %2515 = vmatprep.subr.bf16.mxu0 %v2514_v62  ;;  %v2726_v60 = vpack.c.bf16 %v1976_v58, %v1975_v56  ;;  %v1481_v62 = vld [vmem:[%s4591_s5 + $0x20] sm:$0xff] }
 0x1a6   :  { %2707 = vmatprep.subr.bf16.mxu1 %v2706_v6  ;;  %v2753_v2 = vpack.c.bf16 %v1482_v63, %v1481_v62  ;;  %v1990_v62 = vld [vmem:[%s4591_s5 + $0x108] sm:$0xff]  ;;  %v2007_v63 = vld [vmem:[%s4591_s5 + $0x190] sm:$0xff] }
 0x1a8   :  { %2517 = vmatpush1.bf16.msra.mxu0 %v2516_v11  ;;  %v1486_v11 = vld [vmem:[%s4591_s5 + $0x48] sm:$0xff] }
 0x1a9   :  { %2709 = vmatpush1.bf16.msra.mxu1 %v2708_v13  ;;  %2519 = vmatprep.subr.bf16.mxu0 %v2518_v47  ;;  %v2759_v13 = vpack.c.bf16 %v1486_v11, %v1485_v10  ;;  %v1992_v11 = vld [vmem:[%s4591_s5 + $0x118] sm:$0xff] }
 0x1aa   :  { %2711 = vmatprep.subr.bf16.mxu1 %v2710_v19  ;;  %v1983_v19 = vld [vmem:[%s4591_s5 + $0xd0] sm:$0xff] }
 0x1ab   :  { %v2738_v0 = vpack.c.bf16 %v1984_v21, %v1983_v19  ;;  %v1993_v19 = vld [vmem:[%s4591_s5 + $0x120] sm:$0xff] }
 0x1ac   :  { %2521 = vmatpush1.bf16.msra.mxu0 %v2520_v23  ;;  %v1985_v23 = vld [vmem:[%s4591_s5 + $0xe0] sm:$0xff] }
 0x1ad   :  { %2713 = vmatpush1.bf16.msra.mxu1 %v2712_v24  ;;  %2523 = vmatprep.subr.bf16.mxu0 %v2522_v25  ;;  %v1986_v24 = vld [vmem:[%s4591_s5 + $0xe8] sm:$0xff]  ;;  %v1491_v25 = vld [vmem:[%s4591_s5 + $0x70] sm:$0xff] }
 0x1ae   :  { %2715 = vmatprep.subr.bf16.mxu1 %v2714_v30  ;;  %v2741_v27 = vpack.c.bf16 %v1986_v24, %v1985_v23  ;;  %v2768_v29 = vpack.c.bf16 %v1492_v28, %v1491_v25  ;;  %v1987_v30 = vld [vmem:[%s4591_s5 + $0xf0] sm:$0xff]  ;;  %v1996_v25 = vld [vmem:[%s4591_s5 + $0x138] sm:$0xff]  ;;  %v2014_v28 = vld [vmem:[%s4591_s5 + $0x1c8] sm:$0xff] }
 0x1af   :  { %v2744_v32 = vpack.c.bf16 %v1988_v31, %v1987_v30  ;;  %v1995_v24 = vld [vmem:[%s4591_s5 + $0x130] sm:$0xff]  ;;  %v1997_v31 = vld [vmem:[%s4591_s5 + $0x140] sm:$0xff] }
 0x1b0   :  { %2525 = vmatpush1.bf16.msra.mxu0 %v2524_v35 }
 0x1b1   :  { %2717 = vmatpush1.bf16.msra.mxu1 %v2716_v18  ;;  %2527 = vmatprep.subr.bf16.mxu0 %v2526_v36 }
 0x1b2   :  { %2719 = vmatprep.subr.bf16.mxu1 %v2718_v41 }
 0x1b4   :  { %2529 = vmatpush1.bf16.msra.mxu0 %v2528_v44 }
 0x1b5   :  { %2721 = vmatpush1.bf16.msra.mxu1 %v2720_v45  ;;  %2722 = vmatprep.subr.bf16.mxu0 %v2896_v40  ;;  %v2005_v45 = vld [vmem:[%s4591_s5 + $0x180] sm:$0xff] }
 0x1b6   :  { %2746 = vmatprep.subr.bf16.mxu1 %v2896_v40  ;;  %v2795_v53 = vpack.c.bf16 %v2006_v46, %v2005_v45  ;;  %v2001_v45 = vld [vmem:[%s4591_s5 + $0x160] sm:$0xff]  ;;  %v2002_v46 = vld [vmem:[%s4591_s5 + $0x168] sm:$0xff] }
 0x1b7   :  { %1159 = vmatmul.mubr.f32.vlgmr.msra.gmra.mrb[24].mxu0 %v3566_v26 }
 0x1b8   :  { %1426 = vmatmul.mubr.f32.vlgmr.msra.gmra.mrb[24].mxu1 %v3566_v26  ;;  %1164 = vmatprep.mubr.f32.mxu0 %v3593_v39  ;;  %v1977_v26 = vld [vmem:[%s4591_s5 + $0xa0] sm:$0xff] }
 0x1b9   :  { %1431 = vmatprep.mubr.f32.mxu1 %v3593_v39  ;;  %2748 = vmatpush3.bf16.msra.mxu1 %v2747_v52  ;;  %v1978_v39 = vld [vmem:[%s4591_s5 + $0xa8] sm:$0xff] }
 0x1ba   :  { %2749 = vmatprep.subr.bf16.mxu1 %v2896_v40  ;;  %2724 = vmatpush3.bf16.msra.mxu0 %v2723_v4  ;;  %v2729_v6 = vpack.c.bf16 %v1978_v39, %v1977_v26  ;;  %v2008_v26 = vld [vmem:[%s4591_s5 + $0x198] sm:$0xff] }
 0x1bb   :  { %1165 = vmatmul.mubr.f32.gmra.mrb[26].mxu0 %v3601_v49  ;;  %2725 = vmatprep.subr.bf16.mxu0 %v2896_v40 }
 0x1bc   :  { %1432 = vmatmul.mubr.f32.gmra.mrb[26].mxu1 %v3601_v49  ;;  %1170 = vmatprep.mubr.f32.mxu0 %v3976_v5  ;;  %v1484_v49 = vld [vmem:[%s4591_s5 + $0x38] sm:$0xff] }
 0x1bd   :  { %1437 = vmatprep.mubr.f32.mxu1 %v3976_v5  ;;  %2751 = vmatpush3.bf16.msra.mxu1 %v2750_v59  ;;  %v1980_v5 = vld [vmem:[%s4591_s5 + $0xb8] sm:$0xff]  ;;  %v2756_v9 = vpack.c.bf16 %v1484_v49, %v1483_v7  ;;  %v2771_v49 = vpack.c.bf16 %v1990_v62, %v1989_v55  ;;  %v1835_v62 = vld [vmem:[%s4593_s7] sm:$0xff] }
 0x1be   :  { %2752 = vmatprep.subr.bf16.mxu1 %v2896_v40  ;;  %2727 = vmatpush3.bf16.msra.mxu0 %v2726_v60  ;;  %v2732_v61 = vpack.c.bf16 %v1980_v5, %v1979_v15  ;;  %v2798_v15 = vpack.c.bf16 %v2008_v26, %v2007_v63  ;;  %v1991_v5 = vld [vmem:[%s4591_s5 + $0x110] sm:$0xff]  ;;  %v2004_v55 = vld [vmem:[%s4591_s5 + $0x178] sm:$0xff] }
 0x1bf   :  { %1171 = vmatmul.mubr.f32.gmra.mrb[28].mxu0 %v4008_v20  ;;  %2728 = vmatprep.subr.bf16.mxu0 %v2896_v40  ;;  %v2774_v16 = vpack.c.bf16 %v1992_v11, %v1991_v5  ;;  %v1837_v26 = vld [vmem:[%s4593_s7 + $0x10] sm:$0xff] }
 0x1c0   :  { %1438 = vmatmul.mubr.f32.gmra.mrb[28].mxu1 %v4008_v20  ;;  %1176 = vmatprep.mubr.f32.mxu0 %v531_v1  ;;  %v1982_v20 = vld [vmem:[%s4591_s5 + $0xc8] sm:$0xff] }
 0x1c1   :  { %1443 = vmatprep.mubr.f32.mxu1 %v531_v1  ;;  %2754 = vmatpush3.bf16.msra.mxu1 %v2753_v2  ;;  %v2735_v47 = vpack.c.bf16 %v1982_v20, %v1981_v12  ;;  %v2009_v12 = vld [vmem:[%s4591_s5 + $0x1a0] sm:$0xff]  ;;  %v2010_v20 = vld [vmem:[%s4591_s5 + $0x1a8] sm:$0xff] }
 0x1c2   :  { %2755 = vmatprep.subr.bf16.mxu1 %v2896_v40  ;;  %2730 = vmatpush3.bf16.msra.mxu0 %v2729_v6 }
 0x1c3   :  { %1177 = vmatmul.mubr.f32.gmra.mrb[30].mxu0 %v525_v8  ;;  %2731 = vmatprep.subr.bf16.mxu0 %v2896_v40 }
 0x1c4   :  { %1444 = vmatmul.mubr.f32.gmra.mrb[30].mxu1 %v525_v8  ;;  %2133 = vmatprep.mubr.msk.f32.mxu0 %vm2897_vm1, %v2898_v33 }
 0x1c5   :  { %2757 = vmatpush3.bf16.msra.mxu1 %v2756_v9  ;;  %2168 = vmatprep.mubr.msk.f32.mxu1 %vm2897_vm1, %v2898_v33 }
 0x1c6   :  { %2758 = vmatprep.subr.bf16.mxu1 %v2896_v40  ;;  %2733 = vmatpush3.bf16.msra.mxu0 %v2732_v61 }
 0x1c7   :  { %2734 = vmatprep.subr.bf16.mxu0 %v2896_v40 }
 0x1c9   :  { %2760 = vmatpush3.bf16.msra.mxu1 %v2759_v13 }
 0x1ca   :  { %2761 = vmatprep.subr.bf16.mxu1 %v2896_v40  ;;  %2736 = vmatpush3.bf16.msra.mxu0 %v2735_v47 }
 0x1cb   :  { %2737 = vmatprep.subr.bf16.mxu0 %v2896_v40 }
 0x1cd   :  { %2763 = vmatpush3.bf16.msra.mxu1 %v2762_v17  ;;  %v2801_v17 = vpack.c.bf16 %v2010_v20, %v2009_v12 }
 0x1ce   :  { %2764 = vmatprep.subr.bf16.mxu1 %v2896_v40  ;;  %2739 = vmatpush3.bf16.msra.mxu0 %v2738_v0  ;;  %v2011_v0 = vld [vmem:[%s4591_s5 + $0x1b0] sm:$0xff] }
 0x1cf   :  { %2740 = vmatprep.subr.bf16.mxu0 %v2896_v40  ;;  %v2804_v23 = vpack.c.bf16 %v2012_v57, %v2011_v0 }
 0x1d1   :  { %2766 = vmatpush3.bf16.msra.mxu1 %v2765_v3  ;;  %v2777_v3 = vpack.c.bf16 %v1994_v22, %v1993_v19 }
 0x1d2   :  { %2767 = vmatprep.subr.bf16.mxu1 %v2896_v40  ;;  %2742 = vmatpush3.bf16.msra.mxu0 %v2741_v27  ;;  %v2013_v27 = vld [vmem:[%s4591_s5 + $0x1c0] sm:$0xff] }
 0x1d3   :  { %2743 = vmatprep.subr.bf16.mxu0 %v2896_v40  ;;  %v2807_v30 = vpack.c.bf16 %v2014_v28, %v2013_v27 }
 0x1d5   :  { %2769 = vmatpush3.bf16.msra.mxu1 %v2768_v29  ;;  %v2780_v29 = vpack.c.bf16 %v1996_v25, %v1995_v24 }
 0x1d6   :  { %2794 = vmatprep.subr.bf16.mxu1 %v2896_v40  ;;  %2745 = vmatpush3.bf16.msra.mxu0 %v2744_v32  ;;  %v1998_v32 = vld [vmem:[%s4591_s5 + $0x148] sm:$0xff] }
 0x1d7   :  { %2770 = vmatprep.subr.bf16.mxu0 %v2896_v40 }
 0x28a   :  { %v1160_v34 = vpop.f32.mrb[24].mxu0 }
 0x28b   :  { %v1427_v54 = vpop.f32.mrb[24].mxu1  ;;  %v1162_v35 = vpop.f32.mrb[25].mxu0 }
 0x28c   :  { %v1450_v18 = vmax.f32 %v1160_v34, %v1162_v35  ;;  %v1429_v36 = vpop.f32.mrb[25].mxu1  ;;  %v2015_v34 = vld [vmem:[%s4591_s5 + $0x1d0] sm:$0xff]  ;;  %v2783_v35 = vpack.c.bf16 %v1998_v32, %v1997_v31 }
 0x28d   :  { %v1454_v37 = vmax.f32 %v1427_v54, %v1429_v36  ;;  %v2016_v54 = vld [vmem:[%s4591_s5 + $0x1d8] sm:$0xff]  ;;  %v1999_v36 = vld [vmem:[%s4591_s5 + $0x150] sm:$0xff] }
 0x28e   :  { %v1166_v41 = vpop.f32.mrb[26].mxu0 }
 0x28f   :  { %v1458_v42 = vmax.f32 %v1450_v18, %v1454_v37  ;;  %v1433_v43 = vpop.f32.mrb[26].mxu1  ;;  %v1168_v44 = vpop.f32.mrb[27].mxu0  ;;  %v2810_v18 = vpack.c.bf16 %v2016_v54, %v2015_v34  ;;  %v2000_v37 = vld [vmem:[%s4591_s5 + $0x158] sm:$0xff] }
 0x290   :  { %v1451_v48 = vmax.f32 %v1166_v41, %v1168_v44  ;;  %v1435_v50 = vpop.f32.mrb[27].mxu1  ;;  %v2017_v41 = vld [vmem:[%s4591_s5 + $0x1e0] sm:$0xff] }
 0x291   :  { %v1469_v51 = vadd.f32 %v4424_v38, %v1458_v42  ;;  %v1455_v52 = vmax.f32 %v1433_v43, %v1435_v50  ;;  %v2018_v42 = vld [vmem:[%s4591_s5 + $0x1e8] sm:$0xff]  ;;  %v2786_v43 = vpack.c.bf16 %v2000_v37, %v1999_v36  ;;  %v2020_v50 = vld [vmem:[%s4591_s5 + $0x1f8] sm:$0xff] }
 0x292   :  { %v1172_v4 = vpop.f32.mrb[28].mxu0  ;;  %v2813_v44 = vpack.c.bf16 %v2018_v42, %v2017_v41 }
 0x293   :  { %v1473_v56 = vmax.f32 %v1469_v51, 0.0  ;;  %v1459_v58 = vmax.f32 %v1451_v48, %v1455_v52  ;;  %v1439_v59 = vpop.f32.mrb[28].mxu1  ;;  %v1174_v60 = vpop.f32.mrb[29].mxu0  ;;  %v2019_v48 = vld [vmem:[%s4591_s5 + $0x1f0] sm:$0xff]  ;;  %v2789_v51 = vpack.c.bf16 %v2002_v46, %v2001_v45 }
 0x294   :  { %v1452_v39 = vmax.f32 %v1172_v4, %v1174_v60  ;;  %v1441_v1 = vpop.f32.mrb[29].mxu1  ;;  %v2816_v52 = vpack.c.bf16 %v2020_v50, %v2019_v48 }
 0x295   :  { %v1470_v2 = vadd.f32 %v4424_v38, %v1459_v58  ;;  %v1456_v6 = vmax.f32 %v1439_v59, %v1441_v1  ;;  %2169 = vmatmul.mubr.f32.vlgmr.msra.gmra.mrb[32].mxu1 %v1473_v56 }
 0x296   :  { %2796 = vmatpush3.bf16.msra.mxu1 %v2795_v53  ;;  %v1178_v7 = vpop.f32.mrb[30].mxu0  ;;  %2238 = vmatprep.mubr.msk.f32.mxu1 %vm2897_vm1, %v2898_v33  ;;  %v2003_v53 = vld [vmem:[%s4591_s5 + $0x170] sm:$0xff] }
 0x297   :  { %v1474_v8 = vmax.f32 %v1470_v2, 0.0  ;;  %v4451_v9 = vmax.f32 %v1452_v39, %v1456_v6  ;;  %v1445_v61 = vpop.f32.mrb[30].mxu1  ;;  %v1180_v10 = vpop.f32.mrb[31].mxu0  ;;  %2797 = vmatprep.subr.bf16.mxu1 %v2896_v40  ;;  %v2792_v56 = vpack.c.bf16 %v2004_v55, %v2003_v53  ;;  %v1838_v39 = vld [vmem:[%s4593_s7 + $0x18] sm:$0xff]  ;;  %v1839_v2 = vld [vmem:[%s4593_s7 + $0x20] sm:$0xff]  ;;  %v1840_v6 = vld [vmem:[%s4593_s7 + $0x28] sm:$0xff] }
 0x298   :  { %v1453_v13 = vmax.f32 %v1178_v7, %v1180_v10  ;;  %v1447_v47 = vpop.f32.mrb[31].mxu1  ;;  %v2822_v1 = vpack.c.bf16 %v1838_v39, %v1837_v26  ;;  %v2825_v7 = vpack.c.bf16 %v1840_v6, %v1839_v2 }
 0x299   :  { %v1457_v14 = vmax.f32 %v1445_v61, %v1447_v47  ;;  %2134 = vmatmul.mubr.f32.vlgmr.msra.gmra.mrb[32].mxu0 %v1474_v8  ;;  %v1471_v58 = vadd.f32 %v4424_v38, %v4451_v9 }
 0x29a   :  { %2772 = vmatpush3.bf16.msra.mxu0 %v2771_v49  ;;  %2799 = vmatpush3.bf16.msra.mxu1 %v2798_v15  ;;  %v1841_v49 = vld [vmem:[%s4593_s7 + $0x30] sm:$0x3] }
 0x29b   :  { %v1461_v21 = vmax.f32 %v1453_v13, %v1457_v14  ;;  %2773 = vmatprep.subr.bf16.mxu0 %v2896_v40  ;;  %2800 = vmatprep.subr.bf16.mxu1 %v2896_v40  ;;  %v1475_v60 = vmax.f32 %v1471_v58, 0.0 }
 0x29c   :  { %2203 = vmatprep.mubr.msk.f32.mxu0 %vm2897_vm1, %v2898_v33 }
 0x29d   :  { %v1472_v4 = vadd.f32 %v4424_v38, %v1461_v21  ;;  %v1836_v38 = vld [vmem:[%s4593_s7 + $0x8] sm:$0xff] }
 0x29e   :  { %2775 = vmatpush3.bf16.msra.mxu0 %v2774_v16  ;;  %2802 = vmatpush3.bf16.msra.mxu1 %v2801_v17  ;;  %v2819_v63 = vpack.c.bf16 %v1836_v38, %v1835_v62  ;;  %v2022_v16 = vld [vmem:[%s4594_s8] ss:$0 sm:$0xff] }
 0x29f   :  { %2776 = vmatprep.subr.bf16.mxu0 %v2896_v40  ;;  %2803 = vmatprep.subr.bf16.mxu1 %v2896_v40  ;;  %v1476_v59 = vmax.f32 %v1472_v4, 0.0 }
 0x2a2   :  { %2778 = vmatpush3.bf16.msra.mxu0 %v2777_v3  ;;  %2805 = vmatpush3.bf16.msra.mxu1 %v2804_v23 }
 0x2a3   :  { %2779 = vmatprep.subr.bf16.mxu0 %v2896_v40  ;;  %2806 = vmatprep.subr.bf16.mxu1 %v2896_v40 }
 0x2a6   :  { %2781 = vmatpush3.bf16.msra.mxu0 %v2780_v29  ;;  %2808 = vmatpush3.bf16.msra.mxu1 %v2807_v30 }
 0x2a7   :  { %2782 = vmatprep.subr.bf16.mxu0 %v2896_v40  ;;  %2809 = vmatprep.subr.bf16.mxu1 %v2896_v40 }
 0x2aa   :  { %2784 = vmatpush3.bf16.msra.mxu0 %v2783_v35  ;;  %2811 = vmatpush3.bf16.msra.mxu1 %v2810_v18 }
 0x2ab   :  { %2785 = vmatprep.subr.bf16.mxu0 %v2896_v40  ;;  %2812 = vmatprep.subr.bf16.mxu1 %v2896_v40 }
 0x2ae   :  { %2787 = vmatpush3.bf16.msra.mxu0 %v2786_v43  ;;  %2814 = vmatpush3.bf16.msra.mxu1 %v2813_v44 }
 0x2af   :  { %2788 = vmatprep.subr.bf16.mxu0 %v2896_v40  ;;  %2815 = vmatprep.subr.bf16.mxu1 %v2896_v40 }
 0x2b2   :  { %2790 = vmatpush3.bf16.msra.mxu0 %v2789_v51  ;;  %2817 = vmatpush3.bf16.msra.mxu1 %v2816_v52 }
 0x2b3   :  { %2791 = vmatprep.subr.bf16.mxu0 %v2896_v40 }
 0x2b5   :  { %2239 = vmatmul.mubr.f32.vlgmr.msra.gmra.mrb[34].mxu1 %v1476_v59 }
 0x2b6   :  { %2793 = vmatpush3.bf16.msra.mxu0 %v2792_v56 }
 0x2b7   :  { %2818 = vmatprep.subr.bf16.mxu0 %v2896_v40 }
 0x2b9   :  { %2204 = vmatmul.mubr.f32.vlgmr.msra.gmra.mrb[34].mxu0 %v1475_v60 }
 0x2ba   :  { %2255 = vmatprep.mubr.msk.f32.mxu0 %vm2897_vm1, %v2898_v33  ;;  %2820 = vmatpush3.bf16.msra.mxu0 %v2819_v63 }
 0x2bb   :  { %2821 = vmatprep.subr.bf16.mxu0 %v2896_v40 }
 0x2be   :  { %2823 = vmatpush3.bf16.msra.mxu0 %v2822_v1 }
 0x2bf   :  { %2824 = vmatprep.subr.bf16.mxu0 %v2896_v40 }
 0x2c2   :  { %2826 = vmatpush3.bf16.msra.mxu0 %v2825_v7 }
 0x2c3   :  { %2253 = vmatprep.subr.mxu0 %v2898_v33  ;;  %v2021_v33 = vld [vmem:[%s4592_s6] ss:$0 sm:$0xff] }
 0x2c6   :  { %2254 = vmatpush3.msk.msra.mxu0 %vm1853_vm2, %v1841_v49 }
 0x368   :  { %v1646_v15 = vpop.f32.mrb[32].mxu1 }
 0x369   :  { %v2170_v40 = vpop.f32.mrb[33].mxu1 }
 0x36c   :  { %v1576_v5 = vpop.f32.mrb[32].mxu0 }
 0x36d   :  { %v1647_v8 = vadd.f32 %v1646_v15, %v1576_v5  ;;  %v2135_v9 = vpop.f32.mrb[33].mxu0 }
 0x388   :  { %v1821_v61 = vpop.f32.mrb[34].mxu1 }
 0x389   :  { %v2240_v10 = vpop.f32.mrb[35].mxu1 }
 0x38c   :  { %v1733_v11 = vpop.f32.mrb[34].mxu0 }
 0x38d   :  { %v1737_v12 = vadd.f32 %v1733_v11, %v1647_v8  ;;  %v2205_v20 = vpop.f32.mrb[35].mxu0 }
 0x38f   :  { %v1825_v13 = vadd.f32 %v1821_v61, %v1737_v12 }
 0x391   :  { %v1833_v47 = vadd.f32 %v2021_v33, %v1825_v13 }
 0x393   :  { %v1834_v14 = vmax.f32 %v1833_v47, 0.0 }
 0x395   :  { %2256 = vmatmul.mubr.msk.f32.vlgmr.msra.gmra.mrb[36].mxu0 %vm1849_vm3, %v1834_v14 }
 0x468   :  { %v1923_v17 = vpop.f32.mrb[36].mxu0 }
 0x469   :  { %v1924_v19 = vadd.f32 %v2022_v16, %v1923_v17  ;;  %v2257_v21 = vpop.f32.mrb[37].mxu0 }
 0x46b   :  { %v1928_v22 = vsel %vm1927_vm4, %v1924_v19, -inf }
 0x46c   :  { %1929 = vmax.xlane.f32.xlu0 %v1928_v22 }
 0x4f9   :  { %v1930_v0 = vpop.xlane.xlu0 %1929 }
 0x4fa   :  { %v1931_v57 = vsub.f32 %v1924_v19, %v1930_v0 }
 0x4fc   :  { %v1932_v3 = vmul.f32 1.442695, %v1931_v57 }
 0x4fe   :  { %2865 = vpow2.f32 %v1932_v3 }
 0x508   :  { %v2866_v23 = vpop.eup %2865 }
 0x509   :  { %v1934_v24 = vsel %vm1927_vm4, %v2866_v23, 0.0 }
 0x50a   :  { %1935 = vadd.xlane.f32.xlu0 %v1934_v24 }
 0x597   :  { %v1936_v25 = vpop.xlane.xlu0 %1935 }
 0x598   :  { %2867 = vlog2.f32 %v1936_v25 }
 0x5a2   :  { %v2868_v27 = vpop.eup %2867 }
 0x5a3   :  { %v1938_v28 = vmul.f32 0.6931472, %v2868_v27 }
 0x5a5   :  { %v1939_v29 = vadd.f32 %v1938_v28, %v1930_v0 }
 0x5a7   :  { %v1940_v30 = vsub.f32 %v1924_v19, %v1939_v29 }
 0x5a9   :  { %1941 = vst.msk [vmem:[%s4595_s9] sm:$0xff] %vm1927_vm4, %v1940_v30 }
 0x5aa   :  { %1946 = vsyncpa [#allocation3], 1 }

</bundles_post_ra>
